<compile_context>
chip_gen: v7x
topology: tpu7x:2x2x1
jax: 0.10.0
libtpu: 0.0.40
codegen_flags: <defaults>
</compile_context>

<pallas_src>
import functools

import jax
import jax.numpy as jnp
from jax.experimental import pallas as pl
from jax.experimental.pallas import tpu as pltpu


def _round_up(x, m):
    return (x + m - 1) // m * m


def _vmem_budget_bytes():
    """Physical VMEM of the current generation (v5e/v6e: 128 MiB, v7x: 64 MiB)."""
    try:
        cap = int(pltpu.get_tpu_info().vmem_capacity_bytes)
        if cap <= 0:
            raise ValueError
    except Exception:
        cap = 64 * 1024 * 1024          # conservative fallback (v7x per-core)
    return cap


def _graphs_per_block(b, n, d_in, total_pad, budget_bytes):
    """Graphs per grid step, sized against VMEM and kept to >=2 grid steps."""
    per_g = (2 * n * n * 2              # adj block (bf16), double-buffered
             + 2 * n * d_in * 2         # feature block (bf16), double-buffered
             + 2 * n * total_pad * 4    # output slab (f32), double-buffered
             + 4 * n * total_pad * 4)   # live f32 intermediates in the body
    g = max(1, min(b, budget_bytes // (2 * per_g)))   # 2x headroom
    g = min(g, max(1, b // 2))          # >=2 steps so both v7x cores get work
    while b % g:
        g -= 1
    return g


# ----------------------------------------------------------------------------
# Pallas kernel 1: fused DGCNN graph-convolution stack
#   (all layers, G graphs per grid step, direct lane-slice writes into one
#    lane-dense [N, 128] output slab)
# ----------------------------------------------------------------------------
def make_gconv_kernel(layer_dims, total_pad):
    num_layers = len(layer_dims)

    def kernel(a_ref, x_ref, *rest):
        w_refs = rest[:num_layers]
        o_ref = rest[num_layers]

        a = a_ref[...]                                        # [G, N, N] bf16
        g, n = a.shape[0], a.shape[1]

        # Degree (incl. the +1 self loop) once per graph; exact divide because
        # this normalization feeds the SortPooling key channel.
        deg = jnp.sum(a.astype(jnp.float32), axis=-1, keepdims=True) + 1.0
        inv_deg = 1.0 / deg                                   # [G, N, 1] f32

        # Zero the slab once (covers the pad lanes); real lanes are overwritten
        # by the per-layer slice writes below.
        o_ref[...] = jnp.zeros_like(o_ref)

        cur = x_ref[...]                                      # [G, N, d_in] bf16
        for li, ((d_in, d_out, off), w_ref) in enumerate(zip(layer_dims, w_refs)):
            w = w_ref[...]                                    # [d_in, d_out] bf16
            if d_out == 1:
                # Final 1-channel layer: weighted VPU multiply + XLU lane
                # reduction; avoids a lane-width-1 MXU push / relayout.
                wv = w[:, 0].astype(jnp.float32)              # [d_in]
                xw = jnp.sum(cur.astype(jnp.float32) * wv, axis=-1)       # [G,N]
                agg = jnp.sum(a.astype(jnp.float32) * xw[:, None, :],
                              axis=-1) + xw                               # [G,N]
                act = jnp.tanh(agg * inv_deg[..., 0])[..., None]          # [G,N,1]
            elif d_out <= d_in:
                # Narrowing layer: project first so the N^2 aggregation runs on
                # the narrow result (A@(XW) + XW == (A@X + X)@W).
                xw = jnp.dot(cur.reshape(g * n, d_in), w,
                             preferred_element_type=jnp.float32
                             ).reshape(g, n, d_out)
                agg = jnp.einsum('gij,gjc->gic', a, xw.astype(a.dtype),
                                 preferred_element_type=jnp.float32) + xw
                act = jnp.tanh(agg * inv_deg)
            else:
                # Widening layer: aggregate first on the narrow input.
                n2n = jnp.einsum('gij,gjc->gic', a, cur,
                                 preferred_element_type=jnp.float32
                                 ) + cur.astype(jnp.float32)
                agg = jnp.dot(n2n.reshape(g * n, d_in).astype(a.dtype), w,
                              preferred_element_type=jnp.float32
                              ).reshape(g, n, d_out)
                act = jnp.tanh(agg * inv_deg)

            # Direct lane-slice write: no concat and no extra live temporaries.
            o_ref[:, :, off:off + d_out] = act.astype(o_ref.dtype)
            if li + 1 < num_layers:
                cur = act.astype(a.dtype)                     # bf16 for next matmuls

    return kernel


def gconv_stack(adj, x, weights, total_pad):
    B, N, _ = adj.shape
    d_in = x.shape[-1]
    budget = _vmem_budget_bytes()
    G = _graphs_per_block(B, N, d_in, total_pad, budget)

    dims, off = [], 0
    for w in weights:
        dims.append((w.shape[0], w.shape[1], off))
        off += w.shape[1]

    in_specs = [
        pl.BlockSpec((G, N, N), lambda b: (b, 0, 0)),
        pl.BlockSpec((G, N, d_in), lambda b: (b, 0, 0)),
    ] + [pl.BlockSpec(w.shape, lambda b: (0, 0)) for w in weights]

    return pl.pallas_call(
        make_gconv_kernel(tuple(dims), total_pad),
        out_shape=jax.ShapeDtypeStruct((B, N, total_pad), jnp.float32),
        grid_spec=pltpu.PrefetchScalarGridSpec(
            num_scalar_prefetch=0,
            grid=(B // G,),
            in_specs=in_specs,
            out_specs=pl.BlockSpec((G, N, total_pad), lambda b: (b, 0, 0)),
        ),
        compiler_params=pltpu.CompilerParams(
            dimension_semantics=("parallel",),
            vmem_limit_bytes=max(int(budget * 0.75), 32 * 1024 * 1024)),
    )(adj, x, *weights)


# ----------------------------------------------------------------------------
# Pallas kernel 2: fused SortPooling gather + MLPClassifier readout
#   (one grid step over the whole batch: one-hot gather -> conv1 -> relu ->
#    maxpool -> conv2 -> relu -> dense x3 -> log_softmax)
# ----------------------------------------------------------------------------
def make_mlp_kernel(n_pool):
    def kernel(ie_ref, io_ref, out_ref, w1_ref, b1_ref, w2_ref, b2_ref,
               w3_ref, b3_ref, w4_ref, b4_ref, w5_ref, b5_ref, o_ref):
        out = out_ref[...]                                    # [B, N, 128] f32
        b, n, c = out.shape
        p = n_pool

        def gather(idx):                                      # idx: [B, p] int32
            iota = jax.lax.broadcasted_iota(jnp.int32, (b, p, n), 2)
            sel = (iota == idx[:, :, None]).astype(jnp.float32)   # [B, p, N]
            # SortPooling gather fused in-kernel via one-hot selection matmul.
            return jnp.einsum('bpn,bnc->bpc', sel, out,
                              preferred_element_type=jnp.float32)  # [B, p, 128]

        e_even = gather(ie_ref[...])          # MaxPool1d(2,2) partner slots
        e_odd = gather(io_ref[...])

        def conv1(e):                                         # [B, p, 128] -> [B*p, 16]
            # Conv1d(1,16,K=total,stride=total): per-slot matmul; w1 is
            # zero-padded over the pad lanes so they vanish.
            h = jnp.dot(e.reshape(b * p, c), w1_ref[...],
                        preferred_element_type=jnp.float32) + b1_ref[...]
            return jnp.maximum(h, 0.0)

        pooled = jnp.maximum(conv1(e_even), conv1(e_odd))     # MaxPool1d(2,2)
        c1 = pooled.shape[-1]
        pooled = pooled.reshape(b, p, c1)                     # [B, p, 16]

        # Conv1d(16, 32, 5, 1) over the pooled slots as a sum of per-tap matmuls.
        kk = w2_ref.shape[0]
        feats = []
        for j in range(p - kk + 1):
            acc = b2_ref[...]
            for t in range(kk):
                acc = acc + jnp.dot(pooled[:, j + t, :], w2_ref[t],
                                    preferred_element_type=jnp.float32)
            feats.append(jnp.maximum(acc, 0.0))
        h2 = feats[0] if len(feats) == 1 else jnp.concatenate(feats, axis=-1)

        def dense(x, w_ref, b_ref):
            return jnp.dot(x, w_ref[...],
                           preferred_element_type=jnp.float32) + b_ref[...]

        h3 = jnp.maximum(dense(h2, w3_ref, b3_ref), 0.0)      # [B, FP_len]
        h4 = jnp.maximum(dense(h3, w4_ref, b4_ref), 0.0)      # [B, hidden]
        logits = dense(h4, w5_ref, b5_ref)   # [B, 128]; padded classes bias = -1e9
        m = jnp.max(logits, axis=-1, keepdims=True)
        z = logits - m
        lse = jnp.log(jnp.sum(jnp.exp(z), axis=-1, keepdims=True))
        o_ref[...] = (z - lse).astype(o_ref.dtype)            # log_softmax

    return kernel


def mlp_readout(idx_even, idx_odd, gconv_out, packed, n_pool):
    B = gconv_out.shape[0]
    n_out = packed[-2].shape[-1]                              # padded class dim (128)
    full = lambda shape: pl.BlockSpec(shape, lambda i: tuple(0 for _ in shape))
    return pl.pallas_call(
        make_mlp_kernel(n_pool),
        out_shape=jax.ShapeDtypeStruct((B, n_out), jnp.float32),
        grid_spec=pltpu.PrefetchScalarGridSpec(
            num_scalar_prefetch=0,
            grid=(1,),
            in_specs=[full(idx_even.shape), full(idx_odd.shape),
                      full(gconv_out.shape)] + [full(p.shape) for p in packed],
            out_specs=full((B, n_out)),
        ),
        compiler_params=pltpu.CompilerParams(
            dimension_semantics=("arbitrary",)),
    )(idx_even, idx_odd, gconv_out, *packed)


def pack_mlp_params(raw_params, total, total_pad, class_pad=128):
    """Pack the static MLP weights ONCE (outside the per-forward path).

    Expects w1:[total,16], w2:[K,16,32], dense weights [in,out]; real PyTorch
    Conv1d/Linear checkpoints must be transposed before calling this.
    """
    w1, b1, w2, b2, w3, b3, w4, b4, w5, b5 = raw_params
    # Zero-pad conv1 input rows to the lane-padded channel width so the gconv
    # pad lanes are annihilated inside the matmul.
    w1p = jnp.zeros((total_pad, w1.shape[-1]), jnp.float32).at[:total, :].set(w1)
    num_class = w5.shape[-1]
    w5p = jnp.zeros((w5.shape[0], class_pad),
                    jnp.float32).at[:, :num_class].set(w5)
    # -1e9 bias on padded classes -> exp() underflows to 0 in the normalizer.
    b5p = jnp.full((1, class_pad), -1e9, jnp.float32).at[:, :num_class].set(b5)
    packed = (w1p, b1, w2, b2, w3, b3, w4, b4, w5p, b5p)
    return packed, num_class


# ----------------------------------------------------------------------------
# Full DGCNN forward
# ----------------------------------------------------------------------------
def dgcnn_forward(node_feat, adj, gconv_weights, mlp_packed, num_class, k_sort):
    B, N, _ = adj.shape
    total = sum(w.shape[-1] for w in gconv_weights)
    total_pad = _round_up(total, 128)

    # bf16 inputs: adjacency (0/1) is exact; halves the dominant [B,N,N] DMA.
    adj_b = adj.astype(jnp.bfloat16)
    x_b = node_feat.astype(jnp.bfloat16)

    # 1) fused graph-convolution stack -> [B, N, total_pad] f32 (zero pad lanes)
    out = gconv_stack(adj_b, x_b, gconv_weights, total_pad)

    # 2) SortPooling ordering: top-k by the LAST real channel (descending).
    # TODO(synk): argsort/top-k ordering has no clean Pallas equivalent; it stays
    # in XLA (the gather itself is fused into the readout kernel). Tie-breaking
    # may differ from torch.topk on exactly tied keys.
    key = out[:, :, total - 1]                                # [B, N]
    topk = jnp.argsort(-key, axis=-1)[:, :k_sort].astype(jnp.int32)   # [B, k]
    n_pool = k_sort // 2
    idx_even = topk[:, 0:2 * n_pool:2]                        # [B, n_pool]
    idx_odd = topk[:, 1:2 * n_pool:2]                         # [B, n_pool]

    # 3) fused gather + readout (one grid step over the whole batch)
    log_probs = mlp_readout(idx_even, idx_odd, out, mlp_packed, n_pool)
    return log_probs[:, :num_class]


# ----------------------------------------------------------------------------
# Deterministic parameter init + driver
# ----------------------------------------------------------------------------
if __name__ == "__main__":
    # small shapes consistent with the module's config
    B = 2                     # number of graphs in the batch
    N = 16                    # nodes per graph
    FEAT_DIM, ATTR_DIM, EDGE_FEAT_DIM = 4, 4, 0
    D_IN = FEAT_DIM + ATTR_DIM + EDGE_FEAT_DIM            # 8
    LATENT = [16, 16, 16, 1]                              # convolution_layers_size
    TOTAL = sum(LATENT)                                   # 49
    TOTAL_PAD = _round_up(TOTAL, 128)                     # 128
    K_SORT = 10                                           # sortpooling_k (>=10)
    FP_LEN = 32                                           # config['FP_len']
    N_HIDDEN = 64                                         # config['n_hidden']
    NUM_CLASS = 3

    key = jax.random.PRNGKey(0)
    keys = jax.random.split(key, 20)

    # inputs
    a_rand = jax.random.uniform(keys[0], (B, N, N))
    a_upper = jnp.triu((a_rand > 0.6).astype(jnp.float32), k=1)
    adj = a_upper + jnp.transpose(a_upper, (0, 2, 1))     # symmetric, no self-loops
    node_feat = jax.random.normal(keys[1], (B, N, D_IN), dtype=jnp.float32)

    # graph conv weights (cast once to bf16 for the kernel's MXU path)
    gconv_weights = []
    d_prev = D_IN
    for li, d_out in enumerate(LATENT):
        w = 0.1 * jax.random.normal(keys[2 + li], (d_prev, d_out), dtype=jnp.float32)
        gconv_weights.append(w.astype(jnp.bfloat16))
        d_prev = d_out
    gconv_weights = tuple(gconv_weights)

    # MLP readout weights (matmul-friendly layout; see pack_mlp_params note)
    n_pool = K_SORT // 2
    dense_dim = (n_pool - 5 + 1) * 32                     # 32 for k=10
    kw = jax.random.split(keys[10], 10)
    w1 = 0.1 * jax.random.normal(kw[0], (TOTAL, 16), dtype=jnp.float32)
    b1 = 0.1 * jax.random.normal(kw[1], (1, 16), dtype=jnp.float32)
    w2 = 0.1 * jax.random.normal(kw[2], (5, 16, 32), dtype=jnp.float32)  # conv1d(16,32,5)
    b2 = 0.1 * jax.random.normal(kw[3], (1, 32), dtype=jnp.float32)
    w3 = 0.1 * jax.random.normal(kw[4], (dense_dim, FP_LEN), dtype=jnp.float32)
    b3 = 0.1 * jax.random.normal(kw[5], (1, FP_LEN), dtype=jnp.float32)
    w4 = 0.1 * jax.random.normal(kw[6], (FP_LEN, N_HIDDEN), dtype=jnp.float32)
    b4 = 0.1 * jax.random.normal(kw[7], (1, N_HIDDEN), dtype=jnp.float32)
    w5 = 0.1 * jax.random.normal(kw[8], (N_HIDDEN, NUM_CLASS), dtype=jnp.float32)
    b5 = 0.1 * jax.random.normal(kw[9], (1, NUM_CLASS), dtype=jnp.float32)

    # Pack the static readout weights ONCE, outside the per-call path.
    mlp_packed, num_class = pack_mlp_params(
        (w1, b1, w2, b2, w3, b3, w4, b4, w5, b5), TOTAL, TOTAL_PAD)

    fwd = jax.jit(dgcnn_forward, static_argnums=(4, 5))
    logits = fwd(node_feat, adj, gconv_weights, mlp_packed, num_class, K_SORT)
    logits = jax.block_until_ready(logits)

    assert logits.shape == (B, NUM_CLASS)
    # log_softmax rows must (approximately) exponentiate-sum to 1
    assert jnp.allclose(jnp.exp(logits).sum(-1), 1.0, atol=1e-3)
    print("KERNEL_OK")
</pallas_src>

<mosaic_0001>
module attributes {stable_mosaic.version = 11 : i64} {
  func.func @kernel(%arg0: i32, %arg1: memref<1x16x16xbf16, #tpu.memory_space<vmem>>, %arg2: memref<1x16x8xbf16, #tpu.memory_space<vmem>>, %arg3: memref<8x16xbf16, #tpu.memory_space<vmem>>, %arg4: memref<16x16xbf16, #tpu.memory_space<vmem>>, %arg5: memref<16x16xbf16, #tpu.memory_space<vmem>>, %arg6: memref<16x1xbf16, #tpu.memory_space<vmem>>, %arg7: memref<1x16x128xf32, #tpu.memory_space<vmem>>) attributes {dimension_semantics = [#tpu.dimension_semantics<parallel>], iteration_bounds = array<i64: 2>, scalar_prefetch = 0 : i64, scratch_operands = 0 : i64, tpu.core_type = #tpu.core_type<tc>, window_params = [{transform_indices = @transform_0, window_bounds = array<i64: 1, 16, 16>}, {transform_indices = @transform_1, window_bounds = array<i64: 1, 16, 8>}, {pipeline_mode = #tpu.pipeline_mode<synchronous>, transform_indices = @transform_2, window_bounds = array<i64: 8, 16>}, {pipeline_mode = #tpu.pipeline_mode<synchronous>, transform_indices = @transform_3, window_bounds = array<i64: 16, 16>}, {pipeline_mode = #tpu.pipeline_mode<synchronous>, transform_indices = @transform_4, window_bounds = array<i64: 16, 16>}, {pipeline_mode = #tpu.pipeline_mode<synchronous>, transform_indices = @transform_5, window_bounds = array<i64: 16, 1>}, {transform_indices = @transform_6, window_bounds = array<i64: 1, 16, 128>}]} {
    %c0 = arith.constant 0 : index
    %c0_0 = arith.constant 0 : index
    %c0_1 = arith.constant 0 : index
    %0 = vector.load %arg1[%c0, %c0_0, %c0_1] : memref<1x16x16xbf16, #tpu.memory_space<vmem>>, vector<1x16x16xbf16>
    %1 = arith.extf %0 : vector<1x16x16xbf16> to vector<1x16x16xf32>
    %cst = arith.constant dense<0.000000e+00> : vector<1x16xf32>
    %2 = vector.multi_reduction <add>, %1, %cst [2] : vector<1x16x16xf32> to vector<1x16xf32>
    %3 = vector.shape_cast %2 : vector<1x16xf32> to vector<1x16x1xf32>
    %cst_2 = arith.constant 1.000000e+00 : f32
    %4 = vector.broadcast %cst_2 : f32 to vector<1x16x1xf32>
    %5 = arith.addf %3, %4 : vector<1x16x1xf32>
    %cst_3 = arith.constant 1.000000e+00 : f32
    %6 = vector.broadcast %cst_3 : f32 to vector<1x16x1xf32>
    %7 = arith.divf %6, %5 : vector<1x16x1xf32>
    %cst_4 = arith.constant 0.000000e+00 : f32
    %8 = vector.broadcast %cst_4 : f32 to vector<1x16x128xf32>
    %c0_5 = arith.constant 0 : index
    %c0_6 = arith.constant 0 : index
    %c0_7 = arith.constant 0 : index
    %9 = vector.load %arg7[%c0_5, %c0_6, %c0_7] : memref<1x16x128xf32, #tpu.memory_space<vmem>>, vector<1x16x128xf32>
    tpu.vector_store %arg7[%c0_5, %c0_6, %c0_7], %8 {strides = array<i32>} : memref<1x16x128xf32, #tpu.memory_space<vmem>>, vector<1x16x128xf32>,
    %c0_8 = arith.constant 0 : index
    %c0_9 = arith.constant 0 : index
    %c0_10 = arith.constant 0 : index
    %10 = vector.load %arg2[%c0_8, %c0_9, %c0_10] : memref<1x16x8xbf16, #tpu.memory_space<vmem>>, vector<1x16x8xbf16>
    %c0_11 = arith.constant 0 : index
    %c0_12 = arith.constant 0 : index
    %11 = vector.load %arg3[%c0_11, %c0_12] : memref<8x16xbf16, #tpu.memory_space<vmem>>, vector<8x16xbf16>
    "tpu.trace_start"() <{level = 10 : i32, message = "gij,gjc->gic"}> : () -> ()
    %cst_13 = arith.constant dense<0.000000e+00> : vector<1x16x8xf32>
    %12 = tpu.matmul %0, %10, %cst_13 {dimension_numbers = #tpu.dot_dimension_numbers<[2], [1], [1], [2], [0, 0, 0, 1, 1, 2], [0], [0]>} : vector<1x16x16xbf16>, vector<1x16x8xbf16>, vector<1x16x8xf32> -> vector<1x16x8xf32>
    "tpu.trace_stop"() : () -> ()
    %13 = arith.extf %10 : vector<1x16x8xbf16> to vector<1x16x8xf32>
    %14 = arith.addf %12, %13 : vector<1x16x8xf32>
    %15 = vector.shape_cast %14 : vector<1x16x8xf32> to vector<16x8xf32>
    %16 = arith.truncf %15 : vector<16x8xf32> to vector<16x8xbf16>
    %cst_14 = arith.constant dense<0.000000e+00> : vector<16x16xf32>
    %17 = tpu.matmul %16, %11, %cst_14 {dimension_numbers = #tpu.dot_dimension_numbers<[1], [0], [0], [1], [0, 0, 1, 1], [], []>} : vector<16x8xbf16>, vector<8x16xbf16>, vector<16x16xf32> -> vector<16x16xf32>
    %18 = vector.shape_cast %17 : vector<16x16xf32> to vector<1x16x16xf32>
    %19 = vector.broadcast %7 : vector<1x16x1xf32> to vector<1x16x16xf32>
    %20 = arith.mulf %18, %19 : vector<1x16x16xf32>
    %21 = math.tanh %20 : vector<1x16x16xf32>
    %c0_15 = arith.constant 0 : index
    %c0_16 = arith.constant 0 : index
    %c0_17 = arith.constant 0 : index
    %22 = vector.load %arg7[%c0_15, %c0_16, %c0_17] : memref<1x16x128xf32, #tpu.memory_space<vmem>>, vector<1x16x16xf32>
    tpu.vector_store %arg7[%c0_15, %c0_16, %c0_17], %21 {strides = array<i32>} : memref<1x16x128xf32, #tpu.memory_space<vmem>>, vector<1x16x16xf32>,
    %23 = arith.truncf %21 : vector<1x16x16xf32> to vector<1x16x16xbf16>
    %c0_18 = arith.constant 0 : index
    %c0_19 = arith.constant 0 : index
    %24 = vector.load %arg4[%c0_18, %c0_19] : memref<16x16xbf16, #tpu.memory_space<vmem>>, vector<16x16xbf16>
    %25 = vector.shape_cast %23 : vector<1x16x16xbf16> to vector<16x16xbf16>
    %cst_20 = arith.constant dense<0.000000e+00> : vector<16x16xf32>
    %26 = tpu.matmul %25, %24, %cst_20 {dimension_numbers = #tpu.dot_dimension_numbers<[1], [0], [0], [1], [0, 0, 1, 1], [], []>} : vector<16x16xbf16>, vector<16x16xbf16>, vector<16x16xf32> -> vector<16x16xf32>
    %27 = vector.shape_cast %26 : vector<16x16xf32> to vector<1x16x16xf32>
    %28 = arith.truncf %27 : vector<1x16x16xf32> to vector<1x16x16xbf16>
    "tpu.trace_start"() <{level = 10 : i32, message = "gij,gjc->gic"}> : () -> ()
    %cst_21 = arith.constant dense<0.000000e+00> : vector<1x16x16xf32>
    %29 = tpu.matmul %0, %28, %cst_21 {dimension_numbers = #tpu.dot_dimension_numbers<[2], [1], [1], [2], [0, 0, 0, 1, 1, 2], [0], [0]>} : vector<1x16x16xbf16>, vector<1x16x16xbf16>, vector<1x16x16xf32> -> vector<1x16x16xf32>
    "tpu.trace_stop"() : () -> ()
    %30 = arith.addf %29, %27 : vector<1x16x16xf32>
    %31 = vector.broadcast %7 : vector<1x16x1xf32> to vector<1x16x16xf32>
    %32 = arith.mulf %30, %31 : vector<1x16x16xf32>
    %33 = math.tanh %32 : vector<1x16x16xf32>
    %c0_22 = arith.constant 0 : index
    %c0_23 = arith.constant 0 : index
    %c16 = arith.constant 16 : index
    %34 = vector.load %arg7[%c0_22, %c0_23, %c16] : memref<1x16x128xf32, #tpu.memory_space<vmem>>, vector<1x16x16xf32>
    tpu.vector_store %arg7[%c0_22, %c0_23, %c16], %33 {strides = array<i32>} : memref<1x16x128xf32, #tpu.memory_space<vmem>>, vector<1x16x16xf32>,
    %35 = arith.truncf %33 : vector<1x16x16xf32> to vector<1x16x16xbf16>
    %c0_24 = arith.constant 0 : index
    %c0_25 = arith.constant 0 : index
    %36 = vector.load %arg5[%c0_24, %c0_25] : memref<16x16xbf16, #tpu.memory_space<vmem>>, vector<16x16xbf16>
    %37 = vector.shape_cast %35 : vector<1x16x16xbf16> to vector<16x16xbf16>
    %cst_26 = arith.constant dense<0.000000e+00> : vector<16x16xf32>
    %38 = tpu.matmul %37, %36, %cst_26 {dimension_numbers = #tpu.dot_dimension_numbers<[1], [0], [0], [1], [0, 0, 1, 1], [], []>} : vector<16x16xbf16>, vector<16x16xbf16>, vector<16x16xf32> -> vector<16x16xf32>
    %39 = vector.shape_cast %38 : vector<16x16xf32> to vector<1x16x16xf32>
    %40 = arith.truncf %39 : vector<1x16x16xf32> to vector<1x16x16xbf16>
    "tpu.trace_start"() <{level = 10 : i32, message = "gij,gjc->gic"}> : () -> ()
    %cst_27 = arith.constant dense<0.000000e+00> : vector<1x16x16xf32>
    %41 = tpu.matmul %0, %40, %cst_27 {dimension_numbers = #tpu.dot_dimension_numbers<[2], [1], [1], [2], [0, 0, 0, 1, 1, 2], [0], [0]>} : vector<1x16x16xbf16>, vector<1x16x16xbf16>, vector<1x16x16xf32> -> vector<1x16x16xf32>
    "tpu.trace_stop"() : () -> ()
    %42 = arith.addf %41, %39 : vector<1x16x16xf32>
    %43 = vector.broadcast %7 : vector<1x16x1xf32> to vector<1x16x16xf32>
    %44 = arith.mulf %42, %43 : vector<1x16x16xf32>
    %45 = math.tanh %44 : vector<1x16x16xf32>
    %c0_28 = arith.constant 0 : index
    %c0_29 = arith.constant 0 : index
    %c32 = arith.constant 32 : index
    %46 = vector.load %arg7[%c0_28, %c0_29, %c32] : memref<1x16x128xf32, #tpu.memory_space<vmem>>, vector<1x16x16xf32>
    tpu.vector_store %arg7[%c0_28, %c0_29, %c32], %45 {strides = array<i32>} : memref<1x16x128xf32, #tpu.memory_space<vmem>>, vector<1x16x16xf32>,
    %47 = arith.truncf %45 : vector<1x16x16xf32> to vector<1x16x16xbf16>
    %c0_30 = arith.constant 0 : index
    %c0_31 = arith.constant 0 : index
    %48 = vector.load %arg6[%c0_30, %c0_31] : memref<16x1xbf16, #tpu.memory_space<vmem>>, vector<16x1xbf16>
    %49 = vector.shape_cast %48 : vector<16x1xbf16> to vector<16xbf16>
    %50 = arith.extf %49 : vector<16xbf16> to vector<16xf32>
    %51 = arith.extf %47 : vector<1x16x16xbf16> to vector<1x16x16xf32>
    %52 = vector.shape_cast %50 : vector<16xf32> to vector<1x1x16xf32>
    %53 = vector.broadcast %52 : vector<1x1x16xf32> to vector<1x16x16xf32>
    %54 = arith.mulf %51, %53 : vector<1x16x16xf32>
    %cst_32 = arith.constant dense<0.000000e+00> : vector<1x16xf32>
    %55 = vector.multi_reduction <add>, %54, %cst_32 [2] : vector<1x16x16xf32> to vector<1x16xf32>
    %56 = arith.extf %0 : vector<1x16x16xbf16> to vector<1x16x16xf32>
    %57 = vector.shape_cast %55 : vector<1x16xf32> to vector<1x1x16xf32>
    %58 = vector.broadcast %57 : vector<1x1x16xf32> to vector<1x16x16xf32>
    %59 = arith.mulf %56, %58 : vector<1x16x16xf32>
    %cst_33 = arith.constant dense<0.000000e+00> : vector<1x16xf32>
    %60 = vector.multi_reduction <add>, %59, %cst_33 [2] : vector<1x16x16xf32> to vector<1x16xf32>
    %61 = arith.addf %60, %55 : vector<1x16xf32>
    %62 = vector.shape_cast %7 : vector<1x16x1xf32> to vector<1x16xf32>
    %63 = arith.mulf %61, %62 : vector<1x16xf32>
    %64 = math.tanh %63 : vector<1x16xf32>
    %65 = vector.shape_cast %64 : vector<1x16xf32> to vector<1x16x1xf32>
    %c0_34 = arith.constant 0 : index
    %c0_35 = arith.constant 0 : index
    %c48 = arith.constant 48 : index
    %66 = vector.load %arg7[%c0_34, %c0_35, %c48] : memref<1x16x128xf32, #tpu.memory_space<vmem>>, vector<1x16x1xf32>
    tpu.vector_store %arg7[%c0_34, %c0_35, %c48], %65 {strides = array<i32>} : memref<1x16x128xf32, #tpu.memory_space<vmem>>, vector<1x16x1xf32>,
    return
  }
  func.func @transform_0(%arg0: i32) -> (i32, i32, i32) {
    %c0_i32 = arith.constant 0 : i32
    %c0_i32_0 = arith.constant 0 : i32
    %c0_i32_1 = arith.constant 0 : i32
    return %arg0, %c0_i32, %c0_i32_0 : i32, i32, i32
  }
  func.func @transform_1(%arg0: i32) -> (i32, i32, i32) {
    %c0_i32 = arith.constant 0 : i32
    %c0_i32_0 = arith.constant 0 : i32
    %c0_i32_1 = arith.constant 0 : i32
    return %arg0, %c0_i32, %c0_i32_0 : i32, i32, i32
  }
  func.func @transform_2(%arg0: i32) -> (i32, i32) {
    %c0_i32 = arith.constant 0 : i32
    %c0_i32_0 = arith.constant 0 : i32
    %c0_i32_1 = arith.constant 0 : i32
    return %c0_i32, %c0_i32_0 : i32, i32
  }
  func.func @transform_3(%arg0: i32) -> (i32, i32) {
    %c0_i32 = arith.constant 0 : i32
    %c0_i32_0 = arith.constant 0 : i32
    %c0_i32_1 = arith.constant 0 : i32
    return %c0_i32, %c0_i32_0 : i32, i32
  }
  func.func @transform_4(%arg0: i32) -> (i32, i32) {
    %c0_i32 = arith.constant 0 : i32
    %c0_i32_0 = arith.constant 0 : i32
    %c0_i32_1 = arith.constant 0 : i32
    return %c0_i32, %c0_i32_0 : i32, i32
  }
  func.func @transform_5(%arg0: i32) -> (i32, i32) {
    %c0_i32 = arith.constant 0 : i32
    %c0_i32_0 = arith.constant 0 : i32
    %c0_i32_1 = arith.constant 0 : i32
    return %c0_i32, %c0_i32_0 : i32, i32
  }
  func.func @transform_6(%arg0: i32) -> (i32, i32, i32) {
    %c0_i32 = arith.constant 0 : i32
    %c0_i32_0 = arith.constant 0 : i32
    %c0_i32_1 = arith.constant 0 : i32
    return %arg0, %c0_i32, %c0_i32_0 : i32, i32, i32
  }
}

module attributes {stable_mosaic.version = 11 : i64} {
  func.func @kernel(%arg0: i32, %arg1: memref<2x5xi32, #tpu.memory_space<vmem>>, %arg2: memref<2x5xi32, #tpu.memory_space<vmem>>, %arg3: memref<2x16x128xf32, #tpu.memory_space<vmem>>, %arg4: memref<128x16xf32, #tpu.memory_space<vmem>>, %arg5: memref<1x16xf32, #tpu.memory_space<vmem>>, %arg6: memref<5x16x32xf32, #tpu.memory_space<vmem>>, %arg7: memref<1x32xf32, #tpu.memory_space<vmem>>, %arg8: memref<32x32xf32, #tpu.memory_space<vmem>>, %arg9: memref<1x32xf32, #tpu.memory_space<vmem>>, %arg10: memref<32x64xf32, #tpu.memory_space<vmem>>, %arg11: memref<1x64xf32, #tpu.memory_space<vmem>>, %arg12: memref<64x128xf32, #tpu.memory_space<vmem>>, %arg13: memref<1x128xf32, #tpu.memory_space<vmem>>, %arg14: memref<2x128xf32, #tpu.memory_space<vmem>>) attributes {dimension_semantics = [#tpu.dimension_semantics<arbitrary>], iteration_bounds = array<i64: 1>, scalar_prefetch = 0 : i64, scratch_operands = 0 : i64, tpu.core_type = #tpu.core_type<tc>, window_params = [{pipeline_mode = #tpu.pipeline_mode<synchronous>, transform_indices = @transform_0, window_bounds = array<i64: 2, 5>}, {pipeline_mode = #tpu.pipeline_mode<synchronous>, transform_indices = @transform_1, window_bounds = array<i64: 2, 5>}, {pipeline_mode = #tpu.pipeline_mode<synchronous>, transform_indices = @transform_2, window_bounds = array<i64: 2, 16, 128>}, {pipeline_mode = #tpu.pipeline_mode<synchronous>, transform_indices = @transform_3, window_bounds = array<i64: 128, 16>}, {pipeline_mode = #tpu.pipeline_mode<synchronous>, transform_indices = @transform_4, window_bounds = array<i64: 1, 16>}, {pipeline_mode = #tpu.pipeline_mode<synchronous>, transform_indices = @transform_5, window_bounds = array<i64: 5, 16, 32>}, {pipeline_mode = #tpu.pipeline_mode<synchronous>, transform_indices = @transform_6, window_bounds = array<i64: 1, 32>}, {pipeline_mode = #tpu.pipeline_mode<synchronous>, transform_indices = @transform_7, window_bounds = array<i64: 32, 32>}, {pipeline_mode = #tpu.pipeline_mode<synchronous>, transform_indices = @transform_8, window_bounds = array<i64: 1, 32>}, {pipeline_mode = #tpu.pipeline_mode<synchronous>, transform_indices = @transform_9, window_bounds = array<i64: 32, 64>}, {pipeline_mode = #tpu.pipeline_mode<synchronous>, transform_indices = @transform_10, window_bounds = array<i64: 1, 64>}, {pipeline_mode = #tpu.pipeline_mode<synchronous>, transform_indices = @transform_11, window_bounds = array<i64: 64, 128>}, {pipeline_mode = #tpu.pipeline_mode<synchronous>, transform_indices = @transform_12, window_bounds = array<i64: 1, 128>}, {pipeline_mode = #tpu.pipeline_mode<synchronous>, transform_indices = @transform_13, window_bounds = array<i64: 2, 128>}]} {
    %c0 = arith.constant 0 : index
    %c0_0 = arith.constant 0 : index
    %c0_1 = arith.constant 0 : index
    %0 = vector.load %arg3[%c0, %c0_0, %c0_1] : memref<2x16x128xf32, #tpu.memory_space<vmem>>, vector<2x16x128xf32>
    %c0_2 = arith.constant 0 : index
    %c0_3 = arith.constant 0 : index
    %1 = vector.load %arg1[%c0_2, %c0_3] : memref<2x5xi32, #tpu.memory_space<vmem>>, vector<2x5xi32>
    %2 = tpu.iota {dimensions = array<i32: 2>} : vector<2x5x16xi32>
    %3 = vector.shape_cast %1 : vector<2x5xi32> to vector<2x5x1xi32>
    %4 = vector.broadcast %3 : vector<2x5x1xi32> to vector<2x5x16xi32>
    %5 = arith.cmpi eq, %2, %4 : vector<2x5x16xi32>
    %6 = arith.extui %5 : vector<2x5x16xi1> to vector<2x5x16xi32>
    %7 = arith.sitofp %6 : vector<2x5x16xi32> to vector<2x5x16xf32>
    "tpu.trace_start"() <{level = 10 : i32, message = "bpn,bnc->bpc"}> : () -> ()
    %cst = arith.constant dense<0.000000e+00> : vector<2x5x128xf32>
    %8 = tpu.matmul %7, %0, %cst {dimension_numbers = #tpu.dot_dimension_numbers<[2], [1], [1], [2], [0, 0, 0, 1, 1, 2], [0], [0]>} : vector<2x5x16xf32>, vector<2x16x128xf32>, vector<2x5x128xf32> -> vector<2x5x128xf32>
    "tpu.trace_stop"() : () -> ()
    %c0_4 = arith.constant 0 : index
    %c0_5 = arith.constant 0 : index
    %9 = vector.load %arg2[%c0_4, %c0_5] : memref<2x5xi32, #tpu.memory_space<vmem>>, vector<2x5xi32>
    %10 = tpu.iota {dimensions = array<i32: 2>} : vector<2x5x16xi32>
    %11 = vector.shape_cast %9 : vector<2x5xi32> to vector<2x5x1xi32>
    %12 = vector.broadcast %11 : vector<2x5x1xi32> to vector<2x5x16xi32>
    %13 = arith.cmpi eq, %10, %12 : vector<2x5x16xi32>
    %14 = arith.extui %13 : vector<2x5x16xi1> to vector<2x5x16xi32>
    %15 = arith.sitofp %14 : vector<2x5x16xi32> to vector<2x5x16xf32>
    "tpu.trace_start"() <{level = 10 : i32, message = "bpn,bnc->bpc"}> : () -> ()
    %cst_6 = arith.constant dense<0.000000e+00> : vector<2x5x128xf32>
    %16 = tpu.matmul %15, %0, %cst_6 {dimension_numbers = #tpu.dot_dimension_numbers<[2], [1], [1], [2], [0, 0, 0, 1, 1, 2], [0], [0]>} : vector<2x5x16xf32>, vector<2x16x128xf32>, vector<2x5x128xf32> -> vector<2x5x128xf32>
    "tpu.trace_stop"() : () -> ()
    %17 = vector.shape_cast %8 : vector<2x5x128xf32> to vector<10x128xf32>
    %c0_7 = arith.constant 0 : index
    %c0_8 = arith.constant 0 : index
    %18 = vector.load %arg4[%c0_7, %c0_8] : memref<128x16xf32, #tpu.memory_space<vmem>>, vector<128x16xf32>
    %cst_9 = arith.constant dense<0.000000e+00> : vector<10x16xf32>
    %19 = tpu.matmul %17, %18, %cst_9 {dimension_numbers = #tpu.dot_dimension_numbers<[1], [0], [0], [1], [0, 0, 1, 1], [], []>} : vector<10x128xf32>, vector<128x16xf32>, vector<10x16xf32> -> vector<10x16xf32>
    %c0_10 = arith.constant 0 : index
    %c0_11 = arith.constant 0 : index
    %20 = vector.load %arg5[%c0_10, %c0_11] : memref<1x16xf32, #tpu.memory_space<vmem>>, vector<1x16xf32>
    %21 = vector.broadcast %20 : vector<1x16xf32> to vector<10x16xf32>
    %22 = arith.addf %19, %21 : vector<10x16xf32>
    %cst_12 = arith.constant 0.000000e+00 : f32
    %23 = vector.broadcast %cst_12 : f32 to vector<10x16xf32>
    %24 = arith.maximumf %22, %23 : vector<10x16xf32>
    %25 = vector.shape_cast %16 : vector<2x5x128xf32> to vector<10x128xf32>
    %c0_13 = arith.constant 0 : index
    %c0_14 = arith.constant 0 : index
    %26 = vector.load %arg4[%c0_13, %c0_14] : memref<128x16xf32, #tpu.memory_space<vmem>>, vector<128x16xf32>
    %cst_15 = arith.constant dense<0.000000e+00> : vector<10x16xf32>
    %27 = tpu.matmul %25, %26, %cst_15 {dimension_numbers = #tpu.dot_dimension_numbers<[1], [0], [0], [1], [0, 0, 1, 1], [], []>} : vector<10x128xf32>, vector<128x16xf32>, vector<10x16xf32> -> vector<10x16xf32>
    %c0_16 = arith.constant 0 : index
    %c0_17 = arith.constant 0 : index
    %28 = vector.load %arg5[%c0_16, %c0_17] : memref<1x16xf32, #tpu.memory_space<vmem>>, vector<1x16xf32>
    %29 = vector.broadcast %28 : vector<1x16xf32> to vector<10x16xf32>
    %30 = arith.addf %27, %29 : vector<10x16xf32>
    %cst_18 = arith.constant 0.000000e+00 : f32
    %31 = vector.broadcast %cst_18 : f32 to vector<10x16xf32>
    %32 = arith.maximumf %30, %31 : vector<10x16xf32>
    %33 = arith.maximumf %24, %32 : vector<10x16xf32>
    %34 = vector.shape_cast %33 : vector<10x16xf32> to vector<2x5x16xf32>
    %c0_19 = arith.constant 0 : index
    %c0_20 = arith.constant 0 : index
    %35 = vector.load %arg7[%c0_19, %c0_20] : memref<1x32xf32, #tpu.memory_space<vmem>>, vector<1x32xf32>
    %36 = vector.extract_strided_slice %34 {offsets = [0, 0, 0], sizes = [2, 1, 16], strides = [1, 1, 1]} : vector<2x5x16xf32> to vector<2x1x16xf32>
    %37 = vector.shape_cast %36 : vector<2x1x16xf32> to vector<2x16xf32>
    %c0_21 = arith.constant 0 : index
    %c0_22 = arith.constant 0 : index
    %c0_23 = arith.constant 0 : index
    %38 = vector.load %arg6[%c0_21, %c0_22, %c0_23] : memref<5x16x32xf32, #tpu.memory_space<vmem>>, vector<1x16x32xf32>
    %39 = vector.shape_cast %38 : vector<1x16x32xf32> to vector<16x32xf32>
    %cst_24 = arith.constant dense<0.000000e+00> : vector<2x32xf32>
    %40 = tpu.matmul %37, %39, %cst_24 {dimension_numbers = #tpu.dot_dimension_numbers<[1], [0], [0], [1], [0, 0, 1, 1], [], []>} : vector<2x16xf32>, vector<16x32xf32>, vector<2x32xf32> -> vector<2x32xf32>
    %41 = vector.broadcast %35 : vector<1x32xf32> to vector<2x32xf32>
    %42 = arith.addf %41, %40 : vector<2x32xf32>
    %43 = vector.extract_strided_slice %34 {offsets = [0, 1, 0], sizes = [2, 1, 16], strides = [1, 1, 1]} : vector<2x5x16xf32> to vector<2x1x16xf32>
    %44 = vector.shape_cast %43 : vector<2x1x16xf32> to vector<2x16xf32>
    %c1 = arith.constant 1 : index
    %c0_25 = arith.constant 0 : index
    %c0_26 = arith.constant 0 : index
    %45 = vector.load %arg6[%c1, %c0_25, %c0_26] : memref<5x16x32xf32, #tpu.memory_space<vmem>>, vector<1x16x32xf32>
    %46 = vector.shape_cast %45 : vector<1x16x32xf32> to vector<16x32xf32>
    %cst_27 = arith.constant dense<0.000000e+00> : vector<2x32xf32>
    %47 = tpu.matmul %44, %46, %cst_27 {dimension_numbers = #tpu.dot_dimension_numbers<[1], [0], [0], [1], [0, 0, 1, 1], [], []>} : vector<2x16xf32>, vector<16x32xf32>, vector<2x32xf32> -> vector<2x32xf32>
    %48 = arith.addf %42, %47 : vector<2x32xf32>
    %49 = vector.extract_strided_slice %34 {offsets = [0, 2, 0], sizes = [2, 1, 16], strides = [1, 1, 1]} : vector<2x5x16xf32> to vector<2x1x16xf32>
    %50 = vector.shape_cast %49 : vector<2x1x16xf32> to vector<2x16xf32>
    %c2 = arith.constant 2 : index
    %c0_28 = arith.constant 0 : index
    %c0_29 = arith.constant 0 : index
    %51 = vector.load %arg6[%c2, %c0_28, %c0_29] : memref<5x16x32xf32, #tpu.memory_space<vmem>>, vector<1x16x32xf32>
    %52 = vector.shape_cast %51 : vector<1x16x32xf32> to vector<16x32xf32>
    %cst_30 = arith.constant dense<0.000000e+00> : vector<2x32xf32>
    %53 = tpu.matmul %50, %52, %cst_30 {dimension_numbers = #tpu.dot_dimension_numbers<[1], [0], [0], [1], [0, 0, 1, 1], [], []>} : vector<2x16xf32>, vector<16x32xf32>, vector<2x32xf32> -> vector<2x32xf32>
    %54 = arith.addf %48, %53 : vector<2x32xf32>
    %55 = vector.extract_strided_slice %34 {offsets = [0, 3, 0], sizes = [2, 1, 16], strides = [1, 1, 1]} : vector<2x5x16xf32> to vector<2x1x16xf32>
    %56 = vector.shape_cast %55 : vector<2x1x16xf32> to vector<2x16xf32>
    %c3 = arith.constant 3 : index
    %c0_31 = arith.constant 0 : index
    %c0_32 = arith.constant 0 : index
    %57 = vector.load %arg6[%c3, %c0_31, %c0_32] : memref<5x16x32xf32, #tpu.memory_space<vmem>>, vector<1x16x32xf32>
    %58 = vector.shape_cast %57 : vector<1x16x32xf32> to vector<16x32xf32>
    %cst_33 = arith.constant dense<0.000000e+00> : vector<2x32xf32>
    %59 = tpu.matmul %56, %58, %cst_33 {dimension_numbers = #tpu.dot_dimension_numbers<[1], [0], [0], [1], [0, 0, 1, 1], [], []>} : vector<2x16xf32>, vector<16x32xf32>, vector<2x32xf32> -> vector<2x32xf32>
    %60 = arith.addf %54, %59 : vector<2x32xf32>
    %61 = vector.extract_strided_slice %34 {offsets = [0, 4, 0], sizes = [2, 1, 16], strides = [1, 1, 1]} : vector<2x5x16xf32> to vector<2x1x16xf32>
    %62 = vector.shape_cast %61 : vector<2x1x16xf32> to vector<2x16xf32>
    %c4 = arith.constant 4 : index
    %c0_34 = arith.constant 0 : index
    %c0_35 = arith.constant 0 : index
    %63 = vector.load %arg6[%c4, %c0_34, %c0_35] : memref<5x16x32xf32, #tpu.memory_space<vmem>>, vector<1x16x32xf32>
    %64 = vector.shape_cast %63 : vector<1x16x32xf32> to vector<16x32xf32>
    %cst_36 = arith.constant dense<0.000000e+00> : vector<2x32xf32>
    %65 = tpu.matmul %62, %64, %cst_36 {dimension_numbers = #tpu.dot_dimension_numbers<[1], [0], [0], [1], [0, 0, 1, 1], [], []>} : vector<2x16xf32>, vector<16x32xf32>, vector<2x32xf32> -> vector<2x32xf32>
    %66 = arith.addf %60, %65 : vector<2x32xf32>
    %cst_37 = arith.constant 0.000000e+00 : f32
    %67 = vector.broadcast %cst_37 : f32 to vector<2x32xf32>
    %68 = arith.maximumf %66, %67 : vector<2x32xf32>
    %c0_38 = arith.constant 0 : index
    %c0_39 = arith.constant 0 : index
    %69 = vector.load %arg8[%c0_38, %c0_39] : memref<32x32xf32, #tpu.memory_space<vmem>>, vector<32x32xf32>
    %cst_40 = arith.constant dense<0.000000e+00> : vector<2x32xf32>
    %70 = tpu.matmul %68, %69, %cst_40 {dimension_numbers = #tpu.dot_dimension_numbers<[1], [0], [0], [1], [0, 0, 1, 1], [], []>} : vector<2x32xf32>, vector<32x32xf32>, vector<2x32xf32> -> vector<2x32xf32>
    %c0_41 = arith.constant 0 : index
    %c0_42 = arith.constant 0 : index
    %71 = vector.load %arg9[%c0_41, %c0_42] : memref<1x32xf32, #tpu.memory_space<vmem>>, vector<1x32xf32>
    %72 = vector.broadcast %71 : vector<1x32xf32> to vector<2x32xf32>
    %73 = arith.addf %70, %72 : vector<2x32xf32>
    %cst_43 = arith.constant 0.000000e+00 : f32
    %74 = vector.broadcast %cst_43 : f32 to vector<2x32xf32>
    %75 = arith.maximumf %73, %74 : vector<2x32xf32>
    %c0_44 = arith.constant 0 : index
    %c0_45 = arith.constant 0 : index
    %76 = vector.load %arg10[%c0_44, %c0_45] : memref<32x64xf32, #tpu.memory_space<vmem>>, vector<32x64xf32>
    %cst_46 = arith.constant dense<0.000000e+00> : vector<2x64xf32>
    %77 = tpu.matmul %75, %76, %cst_46 {dimension_numbers = #tpu.dot_dimension_numbers<[1], [0], [0], [1], [0, 0, 1, 1], [], []>} : vector<2x32xf32>, vector<32x64xf32>, vector<2x64xf32> -> vector<2x64xf32>
    %c0_47 = arith.constant 0 : index
    %c0_48 = arith.constant 0 : index
    %78 = vector.load %arg11[%c0_47, %c0_48] : memref<1x64xf32, #tpu.memory_space<vmem>>, vector<1x64xf32>
    %79 = vector.broadcast %78 : vector<1x64xf32> to vector<2x64xf32>
    %80 = arith.addf %77, %79 : vector<2x64xf32>
    %cst_49 = arith.constant 0.000000e+00 : f32
    %81 = vector.broadcast %cst_49 : f32 to vector<2x64xf32>
    %82 = arith.maximumf %80, %81 : vector<2x64xf32>
    %c0_50 = arith.constant 0 : index
    %c0_51 = arith.constant 0 : index
    %83 = vector.load %arg12[%c0_50, %c0_51] : memref<64x128xf32, #tpu.memory_space<vmem>>, vector<64x128xf32>
    %cst_52 = arith.constant dense<0.000000e+00> : vector<2x128xf32>
    %84 = tpu.matmul %82, %83, %cst_52 {dimension_numbers = #tpu.dot_dimension_numbers<[1], [0], [0], [1], [0, 0, 1, 1], [], []>} : vector<2x64xf32>, vector<64x128xf32>, vector<2x128xf32> -> vector<2x128xf32>
    %c0_53 = arith.constant 0 : index
    %c0_54 = arith.constant 0 : index
    %85 = vector.load %arg13[%c0_53, %c0_54] : memref<1x128xf32, #tpu.memory_space<vmem>>, vector<1x128xf32>
    %86 = vector.broadcast %85 : vector<1x128xf32> to vector<2x128xf32>
    %87 = arith.addf %84, %86 : vector<2x128xf32>
    %cst_55 = arith.constant dense<0xFF800000> : vector<2xf32>
    %88 = vector.multi_reduction <maximumf>, %87, %cst_55 [1] : vector<2x128xf32> to vector<2xf32>
    %89 = vector.shape_cast %88 : vector<2xf32> to vector<2x1xf32>
    %90 = vector.broadcast %89 : vector<2x1xf32> to vector<2x128xf32>
    %91 = arith.subf %87, %90 : vector<2x128xf32>
    %92 = math.exp %91 : vector<2x128xf32>
    %cst_56 = arith.constant dense<0.000000e+00> : vector<2xf32>
    %93 = vector.multi_reduction <add>, %92, %cst_56 [1] : vector<2x128xf32> to vector<2xf32>
    %94 = vector.shape_cast %93 : vector<2xf32> to vector<2x1xf32>
    %95 = math.log %94 : vector<2x1xf32>
    %96 = vector.broadcast %95 : vector<2x1xf32> to vector<2x128xf32>
    %97 = arith.subf %91, %96 : vector<2x128xf32>
    %c0_57 = arith.constant 0 : index
    %c0_58 = arith.constant 0 : index
    %98 = vector.load %arg14[%c0_57, %c0_58] : memref<2x128xf32, #tpu.memory_space<vmem>>, vector<2x128xf32>
    tpu.vector_store %arg14[%c0_57, %c0_58], %97 {strides = array<i32>} : memref<2x128xf32, #tpu.memory_space<vmem>>, vector<2x128xf32>,
    return
  }
  func.func @transform_0(%arg0: i32) -> (i32, i32) {
    %c0_i32 = arith.constant 0 : i32
    %c0_i32_0 = arith.constant 0 : i32
    %c0_i32_1 = arith.constant 0 : i32
    return %c0_i32, %c0_i32_0 : i32, i32
  }
  func.func @transform_1(%arg0: i32) -> (i32, i32) {
    %c0_i32 = arith.constant 0 : i32
    %c0_i32_0 = arith.constant 0 : i32
    %c0_i32_1 = arith.constant 0 : i32
    return %c0_i32, %c0_i32_0 : i32, i32
  }
  func.func @transform_2(%arg0: i32) -> (i32, i32, i32) {
    %c0_i32 = arith.constant 0 : i32
    %c0_i32_0 = arith.constant 0 : i32
    %c0_i32_1 = arith.constant 0 : i32
    %c0_i32_2 = arith.constant 0 : i32
    return %c0_i32, %c0_i32_0, %c0_i32_1 : i32, i32, i32
  }
  func.func @transform_3(%arg0: i32) -> (i32, i32) {
    %c0_i32 = arith.constant 0 : i32
    %c0_i32_0 = arith.constant 0 : i32
    %c0_i32_1 = arith.constant 0 : i32
    return %c0_i32, %c0_i32_0 : i32, i32
  }
  func.func @transform_4(%arg0: i32) -> (i32, i32) {
    %c0_i32 = arith.constant 0 : i32
    %c0_i32_0 = arith.constant 0 : i32
    %c0_i32_1 = arith.constant 0 : i32
    return %c0_i32, %c0_i32_0 : i32, i32
  }
  func.func @transform_5(%arg0: i32) -> (i32, i32, i32) {
    %c0_i32 = arith.constant 0 : i32
    %c0_i32_0 = arith.constant 0 : i32
    %c0_i32_1 = arith.constant 0 : i32
    %c0_i32_2 = arith.constant 0 : i32
    return %c0_i32, %c0_i32_0, %c0_i32_1 : i32, i32, i32
  }
  func.func @transform_6(%arg0: i32) -> (i32, i32) {
    %c0_i32 = arith.constant 0 : i32
    %c0_i32_0 = arith.constant 0 : i32
    %c0_i32_1 = arith.constant 0 : i32
    return %c0_i32, %c0_i32_0 : i32, i32
  }
  func.func @transform_7(%arg0: i32) -> (i32, i32) {
    %c0_i32 = arith.constant 0 : i32
    %c0_i32_0 = arith.constant 0 : i32
    %c0_i32_1 = arith.constant 0 : i32
    return %c0_i32, %c0_i32_0 : i32, i32
  }
  func.func @transform_8(%arg0: i32) -> (i32, i32) {
    %c0_i32 = arith.constant 0 : i32
    %c0_i32_0 = arith.constant 0 : i32
    %c0_i32_1 = arith.constant 0 : i32
    return %c0_i32, %c0_i32_0 : i32, i32
  }
  func.func @transform_9(%arg0: i32) -> (i32, i32) {
    %c0_i32 = arith.constant 0 : i32
    %c0_i32_0 = arith.constant 0 : i32
    %c0_i32_1 = arith.constant 0 : i32
    return %c0_i32, %c0_i32_0 : i32, i32
  }
  func.func @transform_10(%arg0: i32) -> (i32, i32) {
    %c0_i32 = arith.constant 0 : i32
    %c0_i32_0 = arith.constant 0 : i32
    %c0_i32_1 = arith.constant 0 : i32
    return %c0_i32, %c0_i32_0 : i32, i32
  }
  func.func @transform_11(%arg0: i32) -> (i32, i32) {
    %c0_i32 = arith.constant 0 : i32
    %c0_i32_0 = arith.constant 0 : i32
    %c0_i32_1 = arith.constant 0 : i32
    return %c0_i32, %c0_i32_0 : i32, i32
  }
  func.func @transform_12(%arg0: i32) -> (i32, i32) {
    %c0_i32 = arith.constant 0 : i32
    %c0_i32_0 = arith.constant 0 : i32
    %c0_i32_1 = arith.constant 0 : i32
    return %c0_i32, %c0_i32_0 : i32, i32
  }
  func.func @transform_13(%arg0: i32) -> (i32, i32) {
    %c0_i32 = arith.constant 0 : i32
    %c0_i32_0 = arith.constant 0 : i32
    %c0_i32_1 = arith.constant 0 : i32
    return %c0_i32, %c0_i32_0 : i32, i32
  }
}

</mosaic_0001>

<bundles_post_ra>
// kernel: dgcnn_forward.2
= control target key start
LH: loop header
LB: loop body
LE: loop exit
PB: predicated region body
PF: predicated region fallthrough
CT: control target
= control target key end

     0   :  { %s951_s21 = smov 0   ;;  %s1059_s0 = inlined_call_operand.vmem [shape: bf16[2,16,16], index: 0, kind: input, shape index: {}]   ;;  %s1060_s1 = inlined_call_operand.vmem [shape: bf16[2,16,8], index: 1, kind: input, shape index: {}]   ;;  %s1061_s2 = inlined_call_operand.vmem [shape: bf16[8,16], index: 2, kind: input, shape index: {}]   ;;  %s1062_s3 = inlined_call_operand.vmem [shape: bf16[16,16], index: 3, kind: input, shape index: {}]   ;;  %s1063_s4 = inlined_call_operand.vmem [shape: bf16[16,16], index: 4, kind: input, shape index: {}]   ;;  %s1064_s5 = inlined_call_operand.vmem [shape: bf16[16,1], index: 5, kind: input, shape index: {}]   ;;  %s1065_s6 = inlined_call_operand.vmem [shape: f32[2,16,128], index: 6, kind: output, shape index: {}]  }
   0x1 LB: > { %s779_s22 = sadd.s32 4294967295, %s909_s21   ;;  %p783_p0 = scmp.ge.s32.totalorder %s909_s21, 1  ;;  %s909_s21 = sphi %s951_s21, %s16_s21  }
   0x2   : > { %p222_p1 = scmp.lt.s32.totalorder %s909_s21, 3 }
   0x4   : > { %p223_p2 = pnand %p783_p0, %p222_p1 }
   0x5   : > { %p257_p3 = scmp.lt.s32.totalorder (!%p223_p2), %s779_s22, 1  ;;  %v911_v0 = vmov (!%p223_p2), 0.0   ;;  %vm912_vm0 = vmmov (!%p223_p2), 0   ;;  %vm277_vm1 = vcmask (!%p223_p2), 130048   ;;  %v294_v3 = vld [vmem:[%s1061_s2] sm:$0xf] (!%p223_p2)  ;;  %v643_v61 = vlaneseq (!%p223_p2) }
   0x6   : > { %226 = sbr.rel (%p223_p2) target bundleno = 1683 (0x693), region = 44  ;;  %821 = vmatprep.subr.bf16.mxu0 (!%p223_p2), %v911_v0  ;;  %823 = vmatprep.mubr.msk.bf16.mxu0 (!%p223_p2), %vm912_vm0, %v911_v0  ;;  %vm357_vm2 = vcmask (!%p223_p2), 1043456   ;;  %vm353_vm3 = vcmask (!%p223_p2), 64512   ;;  %v879_v18 = vld [vmem:[%s1062_s3] sm:$0xff] (!%p223_p2)   ;;  %v913_v52 = vmov (!%p223_p2), 0   ;;  %vm654_vm4 = vcmask (!%p223_p2), 130112  }
   0x7   : > { %827 = vmatprep.subr.bf16.mxu1 (!%p223_p2), %v911_v0  ;;  %829 = vmatprep.mubr.msk.bf16.mxu1 (!%p223_p2), %vm912_vm0, %v911_v0  ;;  %v359_v4 = vsel (!%p223_p2), %vm357_vm2, %v294_v3, 0  ;;  %v880_v39 = vld [vmem:[%s1063_s4] sm:$0xff] (!%p223_p2)   ;;  %s914_s18 = smov (!%p223_p2), 16   ;;  %s915_s19 = smov (!%p223_p2), 32   ;;  %vm515_vm5 = vcmask (!%p223_p2), 261248   ;;  %vm625_vm6 = vcmask (!%p223_p2), 392448  }
   0x8   : > { %828 = vmatpush3.bf16.msra.mxu1 (!%p223_p2), %v359_v4  ;;  %v806_v51 = vld [vmem:[%s1064_s5] sm:$0xff] (!%p223_p2)   ;;  %870 = vset.pattern.permute.xlu1 (!%p223_p2), %v913_v52  ;;  %vm709_vm7 = vcmask (!%p223_p2), 400768  }
   0x9   : > { %839 = vmatprep.subr.bf16.mxu1 (!%p223_p2), %v911_v0  ;;  %v807_v53 = vunpack.c.l.bf16 (!%p223_p2), %v806_v51  ;;  %v808_v54 = vunpack.c.h.bf16 (!%p223_p2), %v806_v51  ;;  %876 = vset.pattern.permute.xlu0 (!%p223_p2), %v913_v52 }
   0xb   : > { %v871_v55 = vpack.i.bf16 (!%p223_p2), %v808_v54, %v807_v53 }
   0xd   : > { %s1067_s22 = smov (!%p257_p3, %s779_s22), 1  ;;  %872 = vperm.xlu1 %870, %v871_v55  }
   0xe   : > { %s802_s23 = sshll.u32 %s1067_s22, 3  ;;  %s804_s24 = sshll.u32 %s1067_s22, 4 }
   0xf   : > { %s261_s27 = scalar_lea.vmem %s1059_s0, %s802_s23  ;;  %s266_s30 = scalar_lea.vmem %s1060_s1, %s802_s23 }
  0x10   : > { %s974_s9 = scalar_lea.vmem %s1065_s6, %s804_s24  ;;  %v976_v1 = vld [vmem:[%s261_s27] sm:$0xff]  }
  0x11   : > { %v292_v2 = vld [vmem:[%s266_s30] sm:$0xff]   ;;  %290 = vst [vmem:[%s974_s9] sm:$0xff] %v911_v0  ;;  %291 = vst [vmem:[%s974_s9 + $0x8] sm:$0xff] %v911_v0  ;;  %v275_v5 = vunpack.c.l.bf16 %v976_v1  ;;  %v276_v6 = vunpack.c.h.bf16 %v976_v1 }
  0x12   : > { %822 = vmatpush3.bf16.msra.mxu0 %v292_v2  ;;  %v295_v9 = vunpack.c.l.bf16 %v292_v2  ;;  %v296_v10 = vunpack.c.h.bf16 %v292_v2 }
  0x13   : > { %833 = vmatprep.subr.bf16.mxu0 %v911_v0  ;;  %v278_v7 = vsel %vm277_vm1, %v275_v5, 0.0  ;;  %v281_v8 = vsel %vm277_vm1, %v276_v6, 0.0 }
  0x14   : > { %279 = vadd.xlane.f32.xlu0 %v278_v7 }
  0x15   : > { %824 = vmatmul.mubr.msk.bf16.vlgmr.msra.gmra.mrb[0].mxu0 %vm277_vm1, %v976_v1 }
  0x16   : > { %835 = vmatprep.mubr.msk.bf16.mxu0 %vm912_vm0, %v911_v0  ;;  %834 = vmatpush3.bf16.msra.mxu0 %v879_v18 }
  0x17   : > { %845 = vmatprep.subr.bf16.mxu0 %v911_v0 }
  0x18   : > { %282 = vadd.xlane.f32.xlu0 %v281_v8  ;;  %v644_v8 = vand.u32 127, %v643_v61 }
  0xa1   : > { %v280_v19 = vpop.xlane.xlu0 %279 }
  0xa2   : > { %v284_v21 = vadd.f32 1.0, %v280_v19 }
  0xa4   : > { %883 = vrcp.f32 %v284_v21 }
  0xa5   : > { %v283_v20 = vpop.xlane.xlu0 %282 }
  0xa6   : > { %v285_v22 = vadd.f32 1.0, %v283_v20 }
  0xa8   : > { %885 = vrcp.f32 %v285_v22 }
  0xae   : > { %v1005_v23 = vpop.eup %883 }
  0xb2   : > { %v1007_v24 = vpop.eup %885 }
  0xe8   : > { %v345_v11 = vpop.f32.mrb[0].mxu0 }
  0xe9   : > { %v825_v12 = vpop.f32.mrb[1].mxu0  ;;  %v346_v14 = vadd.f32 %v345_v11, %v295_v9  ;;  %v649_v11 = vadd.s32 4294967288, %v644_v8 }
  0xea   : > { %v348_v13 = vpop.f32.mrb[2].mxu0  ;;  %v873_v12 = vpop.permute.xlu1 %872 }
  0xeb   : > { %v349_v15 = vadd.f32 %v348_v13, %v296_v10  ;;  %v826_v16 = vpop.f32.mrb[3].mxu0  ;;  %v646_v10 = vshrl.u32 %v643_v61, 7 }
  0xec   : > { %v874_v16 = vunpack.i.l.bf16 %v873_v12 }
  0xed   : > { %v352_v17 = vpack.c.bf16 %v349_v15, %v346_v14  ;;  %v647_v13 = vsub.s32 %v644_v8, %v646_v10  ;;  %v652_v14 = vsub.s32 %v649_v11, %v646_v10  ;;  %v875_v15 = vunpack.i.h.bf16 %v873_v12 }
  0xef   : > { %830 = vmatmul.mubr.msk.bf16.vlgmr.msra.gmra.mrb[0].mxu1 %vm353_vm3, %v352_v17  ;;  %v653_v17 = vrot.slane %v875_v15, %v652_v14  ;;  %v648_v18 = vrot.slane %v874_v16, %v647_v13 }
  0xf0   : > { %841 = vmatprep.mubr.msk.bf16.mxu1 %vm912_vm0, %v911_v0 }
  0xf1   : > { %v655_v22 = vsel %vm654_vm4, %v653_v17, %v648_v18 }
 0x1c2   : > { %v395_v25 = vpop.f32.mrb[0].mxu1 }
 0x1c3   : > { %v402_v26 = vmul.f32 %v1005_v23, %v395_v25  ;;  %v831_v27 = vpop.f32.mrb[1].mxu1 }
 0x1c4   : > { %v398_v28 = vpop.f32.mrb[2].mxu1 }
 0x1c5   : > { %887 = vtanh.f32 %v402_v26  ;;  %v403_v29 = vmul.f32 %v1007_v24, %v398_v28  ;;  %v832_v30 = vpop.f32.mrb[3].mxu1 }
 0x1c7   : > { %889 = vtanh.f32 %v403_v29 }
 0x1cf   : > { %v888_v31 = vpop.eup %887 }
 0x1d0   : > { %406 = vst.msk [vmem:[%s974_s9] sm:$0xff] %vm277_vm1, %v888_v31 }
 0x1d1   : > { %v890_v32 = vpop.eup %889 }
 0x1d2   : > { %407 = vst.msk [vmem:[%s974_s9 + $0x8] sm:$0xff] %vm277_vm1, %v890_v32  ;;  %v408_v33 = vpack.c.bf16 %v890_v32, %v888_v31 }
 0x1d4   : > { %836 = vmatmul.mubr.msk.bf16.vlgmr.msra.gmra.mrb[4].mxu0 %vm277_vm1, %v408_v33 }
 0x1d5   : > { %847 = vmatprep.mubr.msk.bf16.mxu0 %vm912_vm0, %v911_v0  ;;  %846 = vmatpush3.bf16.msra.mxu0 %v880_v39 }
 0x2a7   : > { %v454_v34 = vpop.f32.mrb[4].mxu0 }
 0x2a8   : > { %v837_v35 = vpop.f32.mrb[5].mxu0 }
 0x2a9   : > { %v457_v36 = vpop.f32.mrb[6].mxu0 }
 0x2aa   : > { %v461_v37 = vpack.c.bf16 %v457_v36, %v454_v34  ;;  %v838_v38 = vpop.f32.mrb[7].mxu0 }
 0x2ac   : > { %840 = vmatpush3.bf16.msra.mxu1 %v461_v37 }
 0x2ad   : > { %851 = vmatprep.subr.bf16.mxu1 %v911_v0 }
 0x2af   : > { %842 = vmatmul.mubr.msk.bf16.vlgmr.msra.gmra.mrb[4].mxu1 %vm277_vm1, %v976_v1 }
 0x2b0   : > { %853 = vmatprep.mubr.msk.bf16.mxu1 %vm912_vm0, %v911_v0 }
 0x382   : > { %v496_v40 = vpop.f32.mrb[4].mxu1 }
 0x383   : > { %v497_v41 = vadd.f32 %v496_v40, %v454_v34  ;;  %v843_v42 = vpop.f32.mrb[5].mxu1 }
 0x384   : > { %v499_v43 = vpop.f32.mrb[6].mxu1 }
 0x385   : > { %v503_v44 = vmul.f32 %v1005_v23, %v497_v41  ;;  %v500_v45 = vadd.f32 %v499_v43, %v457_v36  ;;  %v844_v46 = vpop.f32.mrb[7].mxu1 }
 0x387   : > { %v504_v47 = vmul.f32 %v1007_v24, %v500_v45  ;;  %891 = vtanh.f32 %v503_v44 }
 0x389   : > { %893 = vtanh.f32 %v504_v47 }
 0x391   : > { %v892_v48 = vpop.eup %891 }
 0x393   : > { %v894_v49 = vpop.eup %893 }
 0x394   : > { %v518_v50 = vpack.c.bf16 %v894_v49, %v892_v48 }
 0x396   : > { %848 = vmatmul.mubr.msk.bf16.vlgmr.msra.gmra.mrb[8].mxu0 %vm277_vm1, %v518_v50 }
 0x469   : > { %v564_v56 = vpop.f32.mrb[8].mxu0 }
 0x46a   : > { %v849_v57 = vpop.f32.mrb[9].mxu0 }
 0x46b   : > { %v567_v58 = vpop.f32.mrb[10].mxu0 }
 0x46c   : > { %v571_v59 = vpack.c.bf16 %v567_v58, %v564_v56  ;;  %v850_v60 = vpop.f32.mrb[11].mxu0 }
 0x46e   : > { %852 = vmatpush3.bf16.msra.mxu1 %v571_v59 }
 0x471   : > { %854 = vmatmul.mubr.msk.bf16.vlgmr.msra.gmra.mrb[8].mxu1 %vm277_vm1, %v976_v1 }
 0x544   : > { %v606_v62 = vpop.f32.mrb[8].mxu1 }
 0x545   : > { %v607_v63 = vadd.f32 %v606_v62, %v564_v56  ;;  %v855_v0 = vpop.f32.mrb[9].mxu1 }
 0x546   : > { %v609_v2 = vpop.f32.mrb[10].mxu1 }
 0x547   : > { %v613_v3 = vmul.f32 %v1005_v23, %v607_v63  ;;  %v610_v4 = vadd.f32 %v609_v2, %v567_v58  ;;  %v856_v7 = vpop.f32.mrb[11].mxu1 }
 0x549   : > { %v614_v9 = vmul.f32 %v1007_v24, %v610_v4  ;;  %895 = vtanh.f32 %v613_v3 }
 0x54b   : > { %897 = vtanh.f32 %v614_v9 }
 0x553   : > { %v896_v19 = vpop.eup %895 }
 0x555   : > { %v898_v20 = vpop.eup %897 }
 0x556   : > { %v628_v21 = vpack.c.bf16 %v898_v20, %v896_v19 }
 0x558   : > { %v634_v25 = vunpack.c.h.bf16 %v628_v21  ;;  %v633_v26 = vunpack.c.l.bf16 %v628_v21 }
 0x55a   : > { %v670_v27 = vmul.f32 %v655_v22, %v634_v25  ;;  %v669_v28 = vmul.f32 %v655_v22, %v633_v26 }
 0x55c   : > { %v674_v29 = vsel %vm277_vm1, %v670_v27, 0.0  ;;  %v671_v30 = vsel %vm277_vm1, %v669_v28, 0.0 }
 0x55d   : > { %675 = vadd.xlane.f32.xlu0 %v674_v29  ;;  %672 = vadd.xlane.f32.xlu1 %v671_v30 }
 0x56e   : > { %511 = vrot.lane.b32.xlu1 %v894_v49, %s914_s18 }
 0x573   : > { %509 = vrot.lane.b32.xlu0 %v892_v48, %s914_s18 }
 0x577   : > { %619 = vrot.lane.b32.xlu0 %v896_v19, %s915_s19 }
 0x5ea   : > { %v676_v31 = vpop.xlane.xlu0 %675  ;;  %v673_v32 = vpop.xlane.xlu1 %672 }
 0x5eb   : > { %v686_v33 = vrot.slane %v676_v31, %v652_v14  ;;  %v682_v34 = vrot.slane %v673_v32, %v647_v13 }
 0x5ed   : > { %v687_v35 = vsel %vm654_vm4, %v686_v33, %v682_v34 }
 0x5ee   : > { %v510_v36 = vpop.permute.xlu0 %509  ;;  %v512_v37 = vpop.permute.xlu1 %511  ;;  %v695_v38 = vmul.f32 %v687_v35, %v275_v5  ;;  %v696_v40 = vmul.f32 %v687_v35, %v276_v6 }
 0x5ef   : > { %516 = vst.msk [vmem:[%s974_s9] sm:$0xff] %vm515_vm5, %v510_v36  ;;  %517 = vst.msk [vmem:[%s974_s9 + $0x8] sm:$0xff] %vm515_vm5, %v512_v37 }
 0x5f0   : > { %v697_v39 = vsel %vm277_vm1, %v695_v38, 0.0  ;;  %v700_v42 = vsel %vm277_vm1, %v696_v40, 0.0 }
 0x5f1   : > { %698 = vadd.xlane.f32.xlu0 %v697_v39 }
 0x5f2   : > { %v620_v41 = vpop.permute.xlu0 %619 }
 0x5f3   : > { %626 = vst.msk [vmem:[%s974_s9] sm:$0xff] %vm625_vm6, %v620_v41 }
 0x5f5   : > { %701 = vadd.xlane.f32.xlu0 %v700_v42 }
 0x60b   : > { %621 = vrot.lane.b32.xlu0 %v898_v20, %s915_s19 }
 0x67e   : > { %v699_v5 = vpop.xlane.xlu0 %698 }
 0x67f   : > { %v703_v43 = vadd.f32 %v699_v5, %v673_v32 }
 0x681   : > { %v705_v44 = vmul.f32 %v1005_v23, %v703_v43 }
 0x682   : > { %v702_v45 = vpop.xlane.xlu0 %701 }
 0x683   : > { %899 = vtanh.f32 %v705_v44  ;;  %v704_v46 = vadd.f32 %v702_v45, %v676_v31 }
 0x685   : > { %v706_v1 = vmul.f32 %v1007_v24, %v704_v46 }
 0x686   : > { %v622_v6 = vpop.permute.xlu0 %621 }
 0x687   : > { %901 = vtanh.f32 %v706_v1  ;;  %627 = vst.msk [vmem:[%s974_s9 + $0x8] sm:$0xff] %vm625_vm6, %v622_v6 }
 0x68d   : > { %v900_v47 = vpop.eup %899 }
 0x68e   : > { %710 = vst.msk [vmem:[%s974_s9] sm:$0xff] %vm709_vm7, %v900_v47 }
 0x691   : > { %v902_v48 = vpop.eup %901 }
 0x692   : > { %711 = vst.msk [vmem:[%s974_s9 + $0x8] sm:$0xff] %vm709_vm7, %v902_v48 }
 0x693 PF: > { %s16_s21 = sadd.s32 1, %s909_s21  }
 0x694   : > { %p13_p4 = scmp.ge.s32.totalorder %s16_s21, 4  }
 0x696   :  { %15 = sbr.rel (!%p13_p4) target bundleno = 1 (0x1), region = 77 }

// kernel: dgcnn_forward.3
= control target key start
LH: loop header
LB: loop body
LE: loop exit
PB: predicated region body
PF: predicated region fallthrough
CT: control target
= control target key end

     0   :  { %v50_v0 = vlaneseq  ;;  %v2125_v5 = vmov 0.0|0.0   ;;  %vm2126_vm0 = vmmov 0   ;;  %v2127_v7 = vmov 0.0   ;;  %s2489_s0 = inlined_call_operand.vmem [shape: s32[2,5], index: 0, kind: input, shape index: {}]   ;;  %s2490_s1 = inlined_call_operand.vmem [shape: s32[2,5], index: 1, kind: input, shape index: {}]   ;;  %s2491_s2 = inlined_call_operand.vmem [shape: f32[2,16,128], index: 2, kind: input, shape index: {}]   ;;  %s2492_s3 = inlined_call_operand.vmem [shape: f32[128,16], index: 3, kind: input, shape index: {}]   ;;  %s2493_s4 = inlined_call_operand.vmem [shape: f32[1,16], index: 4, kind: input, shape index: {}]   ;;  %s2494_s5 = inlined_call_operand.vmem [shape: f32[5,16,32], index: 5, kind: input, shape index: {}]   ;;  %s2495_s6 = inlined_call_operand.vmem [shape: f32[1,32], index: 6, kind: input, shape index: {}]   ;;  %s2496_s7 = inlined_call_operand.vmem [shape: f32[32,32], index: 7, kind: input, shape index: {}]   ;;  %s2497_s8 = inlined_call_operand.vmem [shape: f32[1,32], index: 8, kind: input, shape index: {}]   ;;  %s2498_s9 = inlined_call_operand.vmem [shape: f32[32,64], index: 9, kind: input, shape index: {}]   ;;  %s2499_s10 = inlined_call_operand.vmem [shape: f32[1,64], index: 10, kind: input, shape index: {}]   ;;  %s2500_s11 = inlined_call_operand.vmem [shape: f32[64,128], index: 11, kind: input, shape index: {}]   ;;  %s2501_s12 = inlined_call_operand.vmem [shape: f32[1,128], index: 12, kind: input, shape index: {}]   ;;  %s2502_s13 = inlined_call_operand.hbm [shape: f32[2,128], index: 13, kind: output, shape index: {}]  }
   0x1   :  { %v45_v1 = vld [vmem:[%s2491_s2] sm:$0xff]  ;;  %v46_v2 = vld [vmem:[%s2491_s2 + $0x8] sm:$0xff]  ;;  %v47_v3 = vld [vmem:[%s2491_s2 + $0x10] sm:$0xff]  ;;  %1968 = vmatprep.subr.bf16.mxu0 %v2125_v5  ;;  %1798 = vmatprep.mubr.msk.f32.mxu0 %vm2126_vm0, %v2127_v7 }
   0x2   :  { %v2209_v4 = vshrl.u32 %v50_v0, 7  ;;  %v1969_v6 = vpack.c.bf16 %v46_v2, %v45_v1  ;;  %v48_v8 = vld [vmem:[%s2491_s2 + $0x18] sm:$0xff] }
   0x3   :  { %18 = vsyncpa [#allocation3], 0  ;;  %v49_v9 = vld [vmem:[%s2489_s0] sm:$0x3]  ;;  %v1972_v11 = vpack.c.bf16 %v48_v8, %v47_v3  ;;  %1977 = vmatprep.subr.bf16.mxu1 %v2125_v5  ;;  %1819 = vmatprep.mubr.msk.f32.mxu1 %vm2126_vm0, %v2127_v7  ;;  %v467_v15 = vld [vmem:[%s2492_s3 + $0x8] sm:$0xff]  ;;  %v51_v21 = vand.u32 127, %v50_v0 }
   0x4   :  { %v219_v10 = vld [vmem:[%s2490_s1] sm:$0x3]  ;;  %v54_v12 = vsub.s32 0, %v2209_v4  ;;  %v61_v13 = vsub.s32 1, %v2209_v4  ;;  %1970 = vmatpush3.bf16.msra.mxu0 %v1969_v6  ;;  %vm72_vm1 = vcmask 130048   ;;  %v468_v27 = vld [vmem:[%s2492_s3 + $0x10] sm:$0xff] }
   0x5   :  { %1971 = vmatprep.subr.bf16.mxu0 %v2125_v5  ;;  %1979 = vmatpush3.bf16.msra.mxu1 %v1972_v11  ;;  %v466_v14 = vld [vmem:[%s2492_s3] sm:$0xff]  ;;  %v469_v28 = vld [vmem:[%s2492_s3 + $0x18] sm:$0xff]  ;;  %v471_v33 = vld [vmem:[%s2492_s3 + $0x28] sm:$0xff]  ;;  %v2128_v51 = vmov 1966171168   ;;  %vm1403_vm6 = vcmask 261120  }
   0x6   :  { %v55_v16 = vrot.slane %v49_v9, %v54_v12  ;;  %v223_v17 = vrot.slane %v219_v10, %v54_v12  ;;  %v1980_v18 = vpack.c.bf16 %v467_v15, %v466_v14  ;;  %v62_v19 = vrot.slane %v49_v9, %v61_v13  ;;  %v470_v32 = vld [vmem:[%s2492_s3 + $0x20] sm:$0xff]  ;;  %v472_v36 = vld [vmem:[%s2492_s3 + $0x30] sm:$0xff]  ;;  %v473_v37 = vld [vmem:[%s2492_s3 + $0x38] sm:$0xff] }
   0x7   :  { %v230_v20 = vrot.slane %v219_v10, %v61_v13  ;;  %v1984_v31 = vpack.c.bf16 %v469_v28, %v468_v27  ;;  %v1988_v35 = vpack.c.bf16 %v471_v33, %v470_v32  ;;  %v1992_v38 = vpack.c.bf16 %v473_v37, %v472_v36  ;;  %v474_v39 = vld [vmem:[%s2492_s3 + $0x40] sm:$0xff]  ;;  %v475_v40 = vld [vmem:[%s2492_s3 + $0x48] sm:$0xff]  ;;  %v476_v42 = vld [vmem:[%s2492_s3 + $0x50] sm:$0xff] }
   0x8   :  { %57 = vbcast.lane.b32.xlu0 %v55_v16, 256  ;;  %225 = vbcast.lane.b32.xlu1 %v223_v17, 256  ;;  %v1996_v41 = vpack.c.bf16 %v475_v40, %v474_v39  ;;  %v477_v43 = vld [vmem:[%s2492_s3 + $0x58] sm:$0xff]  ;;  %v478_v45 = vld [vmem:[%s2492_s3 + $0x60] sm:$0xff]  ;;  %v479_v46 = vld [vmem:[%s2492_s3 + $0x68] sm:$0xff]  ;;  %v390_v52 = vunpack.c.l.s4 %v2128_v51  ;;  %vm1578_vm7 = vcmask 523264  }
   0x9   :  { %2013 = vmatprep.subr.bf16.mxu1 %v1980_v18  ;;  %v2000_v44 = vpack.c.bf16 %v477_v43, %v476_v42  ;;  %v2004_v47 = vpack.c.bf16 %v479_v46, %v478_v45  ;;  %v480_v48 = vld [vmem:[%s2492_s3 + $0x70] sm:$0xff]  ;;  %v481_v49 = vld [vmem:[%s2492_s3 + $0x78] sm:$0xff]  ;;  %vm1652_vm8 = vcmask 1041408  }
   0xa   :  { %v2008_v50 = vpack.c.bf16 %v481_v49, %v480_v48  ;;  %v391_v53 = vunpack.c.0.s8 %v390_v52 }
   0xc   :  { %64 = vbcast.lane.b32.xlu0 %v62_v19, 256  ;;  %232 = vbcast.lane.b32.xlu1 %v230_v20, 256  ;;  %v2293_v54 = vsub.s32 %v391_v53, %v2209_v4 }
  0x7a   :  { %v58_v22 = vpop.permute.xlu0 %57  ;;  %v226_v23 = vpop.permute.xlu1 %225 }
  0x7b   :  { %vm66_vm2 = vcmp.eq.s32.totalorder %v51_v21, %v58_v22  ;;  %vm234_vm5 = vcmp.eq.s32.totalorder %v51_v21, %v226_v23 }
  0x7c   :  { %v1680_v24 = vsel %vm66_vm2, 1.0, %v2127_v7  ;;  %v1684_v34 = vsel %vm234_vm5, 1.0, %v2127_v7 }
  0x7d   :  { %1799 = vmatmul.mubr.msk.f32.vlgmr.msra.gmra.mrb[0].mxu0 %vm72_vm1, %v1680_v24 }
  0x7e   :  { %1973 = vmatpush3.bf16.msra.mxu0 %v1972_v11  ;;  %v65_v25 = vpop.permute.xlu0 %64  ;;  %v233_v26 = vpop.permute.xlu1 %232  ;;  %1805 = vmatprep.mubr.msk.f32.mxu0 %vm2126_vm0, %v2127_v7 }
  0x7f   :  { %vm67_vm3 = vcmp.eq.s32.totalorder %v51_v21, %v65_v25  ;;  %vm235_vm4 = vcmp.eq.s32.totalorder %v51_v21, %v233_v26  ;;  %1974 = vmatprep.subr.bf16.mxu0 %v2125_v5 }
  0x80   :  { %v1681_v29 = vsel %vm67_vm3, 1.0, %v2127_v7  ;;  %v1685_v30 = vsel %vm235_vm4, 1.0, %v2127_v7 }
  0x81   :  { %1806 = vmatmul.mubr.msk.f32.vlgmr.msra.gmra.mrb[2].mxu0 %vm72_vm1, %v1681_v29  ;;  %1820 = vmatmul.mubr.msk.f32.vlgmr.msra.gmra.mrb[0].mxu1 %vm72_vm1, %v1685_v30 }
  0x82   :  { %1976 = vmatpush3.bf16.msra.mxu0 %v1969_v6  ;;  %1812 = vmatprep.mubr.msk.f32.mxu0 %vm2126_vm0, %v2127_v7 }
  0x83   :  { %1981 = vmatprep.subr.bf16.mxu0 %v1980_v18  ;;  %2015 = vmatpush3.bf16.msra.mxu1 %v1980_v18 }
  0x84   :  { %2017 = vmatprep.subr.bf16.mxu1 %v1984_v31 }
  0x85   :  { %1813 = vmatmul.mubr.msk.f32.vlgmr.msra.gmra.mrb[4].mxu0 %vm72_vm1, %v1684_v34 }
  0x86   :  { %1983 = vmatpush3.bf16.msra.mxu0 %v1980_v18 }
  0x87   :  { %1985 = vmatprep.subr.bf16.mxu0 %v1984_v31  ;;  %2019 = vmatpush3.bf16.msra.mxu1 %v1984_v31 }
  0x88   :  { %2021 = vmatprep.subr.bf16.mxu1 %v1988_v35 }
  0x8a   :  { %1987 = vmatpush3.bf16.msra.mxu0 %v1984_v31 }
  0x8b   :  { %1989 = vmatprep.subr.bf16.mxu0 %v1988_v35  ;;  %2023 = vmatpush3.bf16.msra.mxu1 %v1988_v35 }
  0x8c   :  { %2025 = vmatprep.subr.bf16.mxu1 %v1992_v38 }
  0x8e   :  { %1991 = vmatpush3.bf16.msra.mxu0 %v1988_v35 }
  0x8f   :  { %1993 = vmatprep.subr.bf16.mxu0 %v1992_v38  ;;  %2027 = vmatpush3.bf16.msra.mxu1 %v1992_v38 }
  0x90   :  { %2029 = vmatprep.subr.bf16.mxu1 %v1996_v41 }
  0x92   :  { %1995 = vmatpush3.bf16.msra.mxu0 %v1992_v38 }
  0x93   :  { %1997 = vmatprep.subr.bf16.mxu0 %v1996_v41  ;;  %2031 = vmatpush3.bf16.msra.mxu1 %v1996_v41 }
  0x94   :  { %2033 = vmatprep.subr.bf16.mxu1 %v2000_v44 }
  0x96   :  { %1999 = vmatpush3.bf16.msra.mxu0 %v1996_v41 }
  0x97   :  { %2001 = vmatprep.subr.bf16.mxu0 %v2000_v44  ;;  %2035 = vmatpush3.bf16.msra.mxu1 %v2000_v44 }
  0x98   :  { %2037 = vmatprep.subr.bf16.mxu1 %v2004_v47 }
  0x9a   :  { %2003 = vmatpush3.bf16.msra.mxu0 %v2000_v44 }
  0x9b   :  { %2005 = vmatprep.subr.bf16.mxu0 %v2004_v47  ;;  %2039 = vmatpush3.bf16.msra.mxu1 %v2004_v47 }
  0x9c   :  { %2041 = vmatprep.subr.bf16.mxu1 %v2008_v50 }
  0x9e   :  { %2007 = vmatpush3.bf16.msra.mxu0 %v2004_v47 }
  0x9f   :  { %2009 = vmatprep.subr.bf16.mxu0 %v2008_v50  ;;  %2043 = vmatpush3.bf16.msra.mxu1 %v2008_v50 }
  0xa0   :  { %2059 = vmatprep.subr.bf16.mxu1 %v2125_v5 }
  0xa2   :  { %2011 = vmatpush3.bf16.msra.mxu0 %v2008_v50 }
  0xa3   :  { %2044 = vmatprep.subr.bf16.mxu0 %v2125_v5 }
 0x150   :  { %v142_v55 = vpop.f32.mrb[0].mxu0 }
 0x151   :  { %v388_v56 = vcombine.high %v142_v55, %v142_v55  ;;  %v395_v57 = vrot.slane %v142_v55, %v2293_v54  ;;  %v1800_v58 = vpop.f32.mrb[1].mxu0 }
 0x153   :  { %v402_v59 = vrot.slane %v388_v56, %v2293_v54  ;;  %v403_v60 = vcombine.high %v395_v57, %v395_v57  ;;  %v410_v63 = vrot.slane %v395_v57, %v2293_v54 }
 0x154   :  { %v215_v61 = vpop.f32.mrb[2].mxu0  ;;  %v382_v62 = vpop.f32.mrb[0].mxu1 }
 0x155   :  { %v424_v0 = vrot.slane %v403_v60, %v2293_v54  ;;  %v427_v1 = vcombine.high %v215_v61, %v215_v61  ;;  %v434_v2 = vrot.slane %v215_v61, %v2293_v54  ;;  %v1807_v3 = vpop.f32.mrb[3].mxu0  ;;  %v1821_v4 = vpop.f32.mrb[1].mxu1  ;;  %v417_v6 = vrot.slane %v402_v59, %v2293_v54 }
 0x156   :  { %v673_v8 = vcombine.high %v382_v62, %v382_v62  ;;  %v680_v9 = vrot.slane %v382_v62, %v2293_v54  ;;  %v932_v3 = vld [vmem:[%s2494_s5 + $0x8] sm:$0xff] }
 0x157   :  { %v489_v10 = vcombine.low %v410_v63, %v424_v0  ;;  %v1689_v11 = vcombine.high %v410_v63, %v424_v0  ;;  %v441_v12 = vrot.slane %v427_v1, %v2293_v54  ;;  %v442_v13 = vcombine.high %v434_v2, %v434_v2 }
 0x158   :  { %v449_v14 = vrot.slane %v434_v2, %v2293_v54  ;;  %v687_v15 = vrot.slane %v673_v8, %v2293_v54  ;;  %v688_v16 = vcombine.high %v680_v9, %v680_v9  ;;  %v695_v17 = vrot.slane %v680_v9, %v2293_v54  ;;  %v309_v18 = vpop.f32.mrb[4].mxu0  ;;  %v931_v2 = vld [vmem:[%s2494_s5] sm:$0xff]  ;;  %v1393_v8 = vld [vmem:[%s2496_s7 + $0x8] sm:$0xff] }
 0x159   :  { %v499_v19 = vrot.slane %v489_v10, %v2293_v54  ;;  %v506_v20 = vrot.slane %v1689_v11, %v2293_v54  ;;  %v463_v21 = vrot.slane %v442_v13, %v2293_v54  ;;  %v1814_v22 = vpop.f32.mrb[5].mxu0  ;;  %v456_v23 = vrot.slane %v441_v12, %v2293_v54  ;;  %v1688_v11 = vld [vmem:[%s2493_s4] ss:$0 sm:$0xff] }
 0x15a   :  { %v464_v24 = vcombine.high %v449_v14, %v449_v14  ;;  %v491_v25 = vcombine.low %v417_v6, %v449_v14  ;;  %v709_v26 = vrot.slane %v688_v16, %v2293_v54  ;;  %v710_v28 = vcombine.high %v695_v17, %v695_v17  ;;  %v1392_v6 = vld [vmem:[%s2496_s7] sm:$0xff] }
 0x15b   :  { %v465_v27 = vcombine.high %v463_v21, %v463_v21  ;;  %v634_v29 = vcombine.high %v309_v18, %v309_v18  ;;  %v641_v30 = vrot.slane %v309_v18, %v2293_v54  ;;  %v702_v32 = vrot.slane %v687_v15, %v2293_v54 }
 0x15c   :  { %v492_v31 = vcombine.low %v463_v21, %v464_v24  ;;  %v715_v34 = vcombine.low %v709_v26, %v710_v28  ;;  %v513_v37 = vrot.slane %v491_v25, %v2293_v54  ;;  %v711_v39 = vcombine.high %v709_v26, %v709_v26 }
 0x15d   :  { %v538_v33 = vcombine.low %v465_v27, %v456_v23  ;;  %v648_v35 = vrot.slane %v634_v29, %v2293_v54  ;;  %v649_v36 = vcombine.high %v641_v30, %v641_v30  ;;  %v521_v40 = vcombine.low %v499_v19, %v506_v20 }
 0x15e   :  { %v520_v38 = vrot.slane %v492_v31, %v2293_v54  ;;  %v656_v41 = vrot.slane %v641_v30, %v2293_v54  ;;  %v743_v44 = vrot.slane %v715_v34, %v2293_v54  ;;  %v761_v50 = vcombine.low %v711_v39, %v702_v32 }
 0x15f   :  { %v663_v42 = vrot.slane %v648_v35, %v2293_v54  ;;  %v670_v43 = vrot.slane %v649_v36, %v2293_v54  ;;  %v545_v49 = vrot.slane %v538_v33, %v2293_v54  ;;  %v529_v51 = vrot.slane %v521_v40, %v2293_v54 }
 0x160   :  { %v522_v45 = vcombine.low %v513_v37, %v520_v38  ;;  %v768_v61 = vrot.slane %v761_v50, %v2293_v54  ;;  %v2045_v4 = vpack.c.bf16 %v932_v3, %v931_v2  ;;  %v2060_v9 = vpack.c.bf16 %v1393_v8, %v1392_v6  ;;  %v1696_v50 = vld [vmem:[%s2494_s5 + $0x20] sm:$0xff]  ;;  %v1395_v6 = vld [vmem:[%s2496_s7 + $0x18] sm:$0xff] }
 0x161   :  { %v712_v46 = vcombine.low %v656_v41, %v670_v43  ;;  %v1690_v47 = vcombine.high %v656_v41, %v670_v43  ;;  %v714_v48 = vcombine.low %v663_v42, %v695_v17  ;;  %v552_v58 = vrot.slane %v545_v49, %v2293_v54  ;;  %v1693_v43 = vld [vmem:[%s2494_s5 + $0x10] sm:$0xff] }
 0x162   :  { %v536_v52 = vrot.slane %v522_v45, %v2293_v54  ;;  %v775_v1 = vrot.slane %v768_v61, %v2293_v54 }
 0x163   :  { %v722_v53 = vrot.slane %v712_v46, %v2293_v54  ;;  %v729_v55 = vrot.slane %v1690_v47, %v2293_v54  ;;  %v736_v56 = vrot.slane %v714_v48, %v2293_v54 }
 0x164   :  { %v537_v57 = vcombine.low %v529_v51, %v536_v52  ;;  %v1697_v51 = vld [vmem:[%s2494_s5 + $0x28] sm:$0xff] }
 0x165   :  { %v744_v59 = vcombine.low %v722_v53, %v729_v55  ;;  %v745_v60 = vcombine.low %v736_v56, %v743_v44  ;;  %v1694_v44 = vld [vmem:[%s2494_s5 + $0x18] sm:$0xff]  ;;  %v2051_v52 = vpack.c.bf16 %v1697_v51, %v1696_v50 }
 0x166   :  { %1854 = vmatprep.mubr.f32.mxu0 %v537_v57  ;;  %v2048_v46 = vpack.c.bf16 %v1694_v44, %v1693_v43  ;;  %v1700_v57 = vld [vmem:[%s2494_s5 + $0x30] sm:$0xff] }
 0x167   :  { %1855 = vmatmul.mubr.f32.vlgmr.msra.gmra.mrb[6].mxu0 %v552_v58  ;;  %v752_v62 = vrot.slane %v744_v59, %v2293_v54  ;;  %v759_v63 = vrot.slane %v745_v60, %v2293_v54  ;;  %v1701_v58 = vld [vmem:[%s2494_s5 + $0x38] sm:$0xff] }
 0x168   :  { %1896 = vmatprep.mubr.msk.f32.mxu0 %vm2126_vm0, %v2127_v7  ;;  %2046 = vmatpush3.bf16.msra.mxu0 %v2045_v4  ;;  %v2054_v59 = vpack.c.bf16 %v1701_v58, %v1700_v57  ;;  %v1394_v4 = vld [vmem:[%s2496_s7 + $0x10] sm:$0xff] }
 0x169   :  { %v760_v0 = vcombine.low %v752_v62, %v759_v63  ;;  %2047 = vmatprep.subr.bf16.mxu0 %v2125_v5  ;;  %v1703_v62 = vld [vmem:[%s2494_s5 + $0x40] sm:$0xff]  ;;  %v1704_v63 = vld [vmem:[%s2494_s5 + $0x48] sm:$0xff]  ;;  %v2063_v8 = vpack.c.bf16 %v1395_v6, %v1394_v4 }
 0x16b   :  { %1889 = vmatprep.mubr.f32.mxu1 %v760_v0  ;;  %v2057_v0 = vpack.c.bf16 %v1704_v63, %v1703_v62 }
 0x16c   :  { %1890 = vmatmul.mubr.f32.vlgmr.msra.gmra.mrb[2].mxu1 %v775_v1 }
 0x16d   :  { %1935 = vmatprep.mubr.msk.f32.mxu1 %vm2126_vm0, %v2127_v7  ;;  %2061 = vmatpush3.bf16.msra.mxu1 %v2060_v9  ;;  %v1692_v9 = vld [vmem:[%s2495_s6] ss:$0 sm:$0xff] }
 0x16e   :  { %2062 = vmatprep.subr.bf16.mxu1 %v2125_v5 }
 0x171   :  { %2064 = vmatpush3.bf16.msra.mxu1 %v2063_v8 }
 0x172   :  { %2065 = vmatprep.subr.bf16.mxu1 %v2125_v5 }
 0x23a   :  { %v1856_v10 = vpop.f32.mrb[6].mxu0 }
 0x23b   :  { %v621_v12 = vpop.f32.mrb[7].mxu0  ;;  %v627_v13 = vadd.f32 %v1856_v10, %v1688_v11  ;;  %v1479_v10 = vld [vmem:[%s2498_s9 + $0x8] sm:$0xff] }
 0x23c   :  { %v622_v14 = vadd.f32 %v1688_v11, %v621_v12 }
 0x23d   :  { %v631_v19 = vmax.f32 %v627_v13, 0.0 }
 0x23e   :  { %v630_v21 = vmax.f32 %v622_v14, 0.0 }
 0x23f   :  { %v1891_v15 = vpop.f32.mrb[2].mxu1 }
 0x240   :  { %v850_v16 = vadd.f32 %v1891_v15, %v1688_v11  ;;  %v844_v17 = vpop.f32.mrb[3].mxu1 }
 0x241   :  { %v845_v18 = vadd.f32 %v1688_v11, %v844_v17  ;;  %v1481_v17 = vld [vmem:[%s2498_s9 + $0x18] sm:$0xff] }
 0x242   :  { %v854_v20 = vmax.f32 %v850_v16, 0.0  ;;  %v1480_v16 = vld [vmem:[%s2498_s9 + $0x10] sm:$0xff] }
 0x243   :  { %v853_v22 = vmax.f32 %v845_v18, 0.0  ;;  %v2069_v18 = vpack.c.bf16 %v1481_v17, %v1480_v16 }
 0x244   :  { %v856_v23 = vmax.f32 %v631_v19, %v854_v20  ;;  %v1706_v19 = vld [vmem:[%s2497_s8] ss:$0 sm:$0xff] }
 0x245   :  { %v855_v24 = vmax.f32 %v630_v21, %v853_v22  ;;  %v1563_v20 = vld [vmem:[%s2500_s11] sm:$0xff]  ;;  %v1564_v21 = vld [vmem:[%s2500_s11 + $0x8] sm:$0xff] }
 0x246   :  { %v914_v25 = vrot.slane %v856_v23, %v2293_v54 }
 0x247   :  { %v859_v26 = vcombine.high %v855_v24, %v855_v24  ;;  %v866_v27 = vrot.slane %v855_v24, %v2293_v54 }
 0x248   :  { %v915_v28 = vcombine.high %v914_v25, %v914_v25  ;;  %v922_v35 = vrot.slane %v914_v25, %v2293_v54  ;;  %v2072_v25 = vpack.c.bf16 %v1564_v21, %v1563_v20 }
 0x249   :  { %v873_v29 = vrot.slane %v859_v26, %v2293_v54  ;;  %v874_v30 = vcombine.high %v866_v27, %v866_v27  ;;  %v882_v36 = vrot.slane %v866_v27, %v2293_v54  ;;  %v1565_v27 = vld [vmem:[%s2500_s11 + $0x10] sm:$0xff] }
 0x24a   :  { %v929_v31 = vrot.slane %v915_v28, %v2293_v54  ;;  %v1566_v28 = vld [vmem:[%s2500_s11 + $0x18] sm:$0xff] }
 0x24b   :  { %v875_v32 = vcombine.high %v873_v29, %v873_v29  ;;  %v889_v33 = vrot.slane %v873_v29, %v2293_v54  ;;  %v896_v34 = vrot.slane %v874_v30, %v2293_v54  ;;  %v2075_v29 = vpack.c.bf16 %v1566_v28, %v1565_v27  ;;  %v1567_v30 = vld [vmem:[%s2500_s11 + $0x20] sm:$0xff] }
 0x24d   :  { %v903_v37 = vrot.slane %v875_v32, %v2293_v54  ;;  %v906_v38 = vcombine.high %v896_v34, %v896_v34  ;;  %v1303_v39 = vcombine.low %v889_v33, %v929_v31  ;;  %v905_v40 = vcombine.high %v889_v33, %v889_v33  ;;  %v1568_v31 = vld [vmem:[%s2500_s11 + $0x28] sm:$0xff]  ;;  %v1570_v33 = vld [vmem:[%s2500_s11 + $0x38] sm:$0xff] }
 0x24e   :  { %v2078_v32 = vpack.c.bf16 %v1568_v31, %v1567_v30 }
 0x24f   :  { %v933_v41 = vcombine.low %v882_v36, %v903_v37  ;;  %v1212_v42 = vcombine.low %v906_v38, %v922_v35  ;;  %v1030_v47 = vcombine.low %v896_v34, %v905_v40  ;;  %v1698_v53 = vcombine.high %v882_v36, %v903_v37  ;;  %v1708_v35 = vld [vmem:[%s2499_s10] ss:$0 sm:$0xff]  ;;  %s2129_s10 = smov [#allocation2]  }
 0x250   :  { %v1310_v2 = vrot.slane %v1303_v39, %v2293_v54 }
 0x251   :  { %v940_v45 = vrot.slane %v933_v41, %v2293_v54  ;;  %v1037_v49 = vrot.slane %v1030_v47, %v2293_v54  ;;  %v1128_v56 = vrot.slane %v1698_v53, %v2293_v54  ;;  %v1219_v61 = vrot.slane %v1212_v42, %v2293_v54 }
 0x252   :  { %v1317_v3 = vrot.slane %v1310_v2, %v2293_v54 }
 0x253   :  { %v947_v48 = vrot.slane %v940_v45, %v2293_v54  ;;  %v1044_v55 = vrot.slane %v1037_v49, %v2293_v54  ;;  %v1135_v60 = vrot.slane %v1128_v56, %v2293_v54  ;;  %v1226_v1 = vrot.slane %v1219_v61, %v2293_v54  ;;  %v1478_v54 = vld [vmem:[%s2498_s9] sm:$0xff] }
 0x254   :  { %v2066_v14 = vpack.c.bf16 %v1479_v10, %v1478_v54 }
 0x255   :  { %1897 = vmatmul.mubr.msk.f32.vlgmr.msra.gmra.mrb[8].mxu0 %vm72_vm1, %v947_v48 }
 0x256   :  { %2049 = vmatpush3.bf16.msra.mxu0 %v2048_v46  ;;  %1903 = vmatprep.mubr.msk.f32.mxu0 %vm2126_vm0, %v2127_v7 }
 0x257   :  { %2050 = vmatprep.subr.bf16.mxu0 %v2125_v5 }
 0x25d   :  { %1904 = vmatmul.mubr.msk.f32.vlgmr.msra.gmra.mrb[8].mxu0 %vm72_vm1, %v1044_v55 }
 0x25e   :  { %2052 = vmatpush3.bf16.msra.mxu0 %v2051_v52  ;;  %1910 = vmatprep.mubr.msk.f32.mxu0 %vm2126_vm0, %v2127_v7 }
 0x25f   :  { %2053 = vmatprep.subr.bf16.mxu0 %v2125_v5 }
 0x265   :  { %1911 = vmatmul.mubr.msk.f32.vlgmr.msra.gmra.mrb[8].mxu0 %vm72_vm1, %v1135_v60 }
 0x266   :  { %2055 = vmatpush3.bf16.msra.mxu0 %v2054_v59  ;;  %1917 = vmatprep.mubr.msk.f32.mxu0 %vm2126_vm0, %v2127_v7 }
 0x267   :  { %2056 = vmatprep.subr.bf16.mxu0 %v2125_v5 }
 0x26d   :  { %1918 = vmatmul.mubr.msk.f32.vlgmr.msra.gmra.mrb[8].mxu0 %vm72_vm1, %v1226_v1 }
 0x26e   :  { %2058 = vmatpush3.bf16.msra.mxu0 %v2057_v0  ;;  %1924 = vmatprep.mubr.msk.f32.mxu0 %vm2126_vm0, %v2127_v7 }
 0x275   :  { %1925 = vmatmul.mubr.msk.f32.vlgmr.msra.gmra.mrb[8].mxu0 %vm72_vm1, %v1317_v3 }
 0x348   :  { %v1386_v11 = vpop.f32.mrb[8].mxu0 }
 0x349   :  { %v2083_v12 = vadd.f32 %v1692_v9, %v1386_v11  ;;  %v1926_v13 = vpop.f32.mrb[9].mxu0 }
 0x34b   :  { %v1391_v15 = vmax.f32 %v2083_v12, 0.0 }
 0x34d   :  { %1936 = vmatmul.mubr.msk.f32.vlgmr.msra.gmra.mrb[4].mxu1 %vm1403_vm6, %v1391_v15 }
 0x34e   :  { %2067 = vmatpush3.bf16.msra.mxu1 %v2066_v14  ;;  %1946 = vmatprep.mubr.msk.f32.mxu1 %vm2126_vm0, %v2127_v7 }
 0x34f   :  { %2068 = vmatprep.subr.bf16.mxu1 %v2125_v5 }
 0x352   :  { %2070 = vmatpush3.bf16.msra.mxu1 %v2069_v18 }
 0x353   :  { %2071 = vmatprep.subr.bf16.mxu1 %v2125_v5 }
 0x420   :  { %v1473_v22 = vpop.f32.mrb[4].mxu1 }
 0x421   :  { %v1474_v23 = vadd.f32 %v1706_v19, %v1473_v22  ;;  %v1937_v24 = vpop.f32.mrb[5].mxu1 }
 0x423   :  { %v1477_v26 = vmax.f32 %v1474_v23, 0.0 }
 0x425   :  { %1947 = vmatmul.mubr.msk.f32.vlgmr.msra.gmra.mrb[6].mxu1 %vm1403_vm6, %v1477_v26 }
 0x426   :  { %2073 = vmatpush3.bf16.msra.mxu1 %v2072_v25  ;;  %1965 = vmatprep.mubr.msk.f32.mxu1 %vm2126_vm0, %v2127_v7  ;;  %v1569_v7 = vld [vmem:[%s2500_s11 + $0x30] sm:$0xff]  ;;  %s1672_s11 = sshll.u32 %s2129_s10, 4  ;;  %s1673_s11 = int_to_ptr.vmem [resolvable:$true] %s1672_s11 }
 0x427   :  { %2074 = vmatprep.subr.bf16.mxu1 %v2125_v5  ;;  %v2081_v34 = vpack.c.bf16 %v1570_v33, %v1569_v7  ;;  %p2106_p1 = scmp.lt.s32.totalorder %s1673_s11, %s1673_s11 }
 0x42a   :  { %2076 = vmatpush3.bf16.msra.mxu1 %v2075_v29 }
 0x42b   :  { %2077 = vmatprep.subr.bf16.mxu1 %v2125_v5 }
 0x42e   :  { %2079 = vmatpush3.bf16.msra.mxu1 %v2078_v32 }
 0x42f   :  { %2080 = vmatprep.subr.bf16.mxu1 %v2125_v5  ;;  %v1710_v5 = vld [vmem:[%s2501_s12] ss:$0 sm:$0xff]  ;;  %s2101_s12 = scalar_lea.vmem %s1673_s11, 32 }
 0x430   :  { %p2102_p0 = scmp.ne.s32.totalorder %s1673_s11, %s2101_s12  ;;  %p2107_p2 = scmp.lt.s32.totalorder %s2101_s12, %s2101_s12 }
 0x432   :  { %2082 = vmatpush3.bf16.msra.mxu1 %v2081_v34  ;;  %p2108_p3 = por %p2107_p2, %p2106_p1 }
 0x434   :  { %p2109_p4 = pnand %p2108_p3, %p2102_p0 }
 0x4f8   :  { %v1558_v36 = vpop.f32.mrb[6].mxu1 }
 0x4f9   :  { %v1559_v37 = vadd.f32 %v1708_v35, %v1558_v36  ;;  %v1948_v38 = vpop.f32.mrb[7].mxu1 }
 0x4fb   :  { %v1562_v39 = vmax.f32 %v1559_v37, 0.0 }
 0x4fd   :  { %1966 = vmatmul.mubr.msk.f32.vlgmr.msra.gmra.mrb[8].mxu1 %vm1578_vm7, %v1562_v39 }
 0x5d0   :  { %v1648_v40 = vpop.f32.mrb[8].mxu1 }
 0x5d1   :  { %v1649_v41 = vadd.f32 %v1710_v5, %v1648_v40  ;;  %v1967_v42 = vpop.f32.mrb[9].mxu1 }
 0x5d3   :  { %v1653_v43 = vsel %vm1652_vm8, %v1649_v41, -inf }
 0x5d4   :  { %1654 = vmax.xlane.f32.xlu0 %v1653_v43 }
 0x661   :  { %v1655_v44 = vpop.xlane.xlu0 %1654 }
 0x662   :  { %v1656_v45 = vsub.f32 %v1649_v41, %v1655_v44 }
 0x664   :  { %v1657_v46 = vmul.f32 1.442695, %v1656_v45 }
 0x666   :  { %2097 = vpow2.f32 %v1657_v46 }
 0x670   :  { %v2098_v47 = vpop.eup %2097 }
 0x671   :  { %v1659_v48 = vsel %vm1652_vm8, %v2098_v47, 0.0 }
 0x672   :  { %1660 = vadd.xlane.f32.xlu1 %v1659_v48 }
 0x6ff   :  { %v1661_v49 = vpop.xlane.xlu1 %1660 }
 0x700   :  { %2099 = vlog2.f32 %v1661_v49 }
 0x70a   :  { %v2100_v50 = vpop.eup %2099 }
 0x70b   :  { %v1663_v51 = vmul.f32 0.6931472, %v2100_v50 }
 0x70d   :  { %v1664_v52 = vsub.f32 %v1656_v45, %v1663_v51 }
 0x70f   :  { %1665 = vst [vmem:[#allocation2] sm:$0x3] %v1664_v52 }
 0x710   :  { %2112 = shalt.err (!%p2109_p4)
}
 0x711   :  { %s2113_s7 = scalar_lea.hbm %s2502_s13, 32 }
 0x712   :  { %p2114_p5 = scmp.ne.s32.totalorder %s2502_s13, %s2113_s7  ;;  %p2117_p6 = scmp.lt.u32.totalorder %s2113_s7, %s2502_s13 }
 0x714   :  { %p2119_p7 = pnand %p2117_p6, %p2114_p5 }
 0x716   :  { %2122 = shalt.err (!%p2119_p7)
}
 0x717   :  { %1675 = dma.vmem_to_hbm [thread:$0]  %s1673_s11, 32, %s2502_s13, [#allocation3]  }
 0x718   :  { %2123 = dma.done.wait [#allocation3], 32  }
 0x719   :  { %2124 = vsyncadd [#allocation3], 4294967264 }
 0x71a   :  { %1679 = vsyncpa [#allocation3], 1 }

</bundles_post_ra>
